<compile_context>
chip_gen: v5e
topology: v5e:2x2
jax: 0.10.0
libtpu: 0.0.40
codegen_flags: <defaults>
</compile_context>

<pallas_src>
import functools

import numpy as np
import jax
import jax.numpy as jnp
from jax import lax
from jax.experimental import pallas as pl
from jax.experimental.pallas import tpu as pltpu


_TAP_OFFSETS = tuple((kh - 1, kw - 1) for kh in range(3) for kw in range(3))


def _shift_lanes(x, delta, pad, length):
    """y[..., p] = x[..., p + delta], zero-filled where p + delta is outside [0, length).

    Implemented as an aligned lane concatenation (pad is a multiple of 128) followed
    by a static lane slice: semantics are explicit (no hardware-rotate convention
    dependence) and both ops lower robustly in Mosaic.
    """
    rows = x.shape[0]
    z = jnp.zeros((rows, pad), x.dtype)
    xp = jnp.concatenate([z, x, z], axis=-1)
    return xp[:, pad + delta: pad + delta + length]


def _res_block_kernel(Nb, HW, W, offs, pad,
                      x_ref, xa_ref, cst_ref,
                      w1_ref, w2_ref, w3_ref,
                      s1_ref, t1_ref, s2_ref, t2_ref, b2_ref, b3_ref,
                      y_ref, yavg_ref):
    f32 = jnp.float32
    L = Nb * HW

    # ---- stage the image block into the folded lane layout (C, Nb*HW) ----
    # Each piece is HW = H*W lanes (multiple of 128) so the concat is aligned.
    if Nb == 1:
        x2, xa2 = x_ref[0], xa_ref[0]
    else:
        x2 = jnp.concatenate([x_ref[n] for n in range(Nb)], axis=-1)
        xa2 = jnp.concatenate([xa_ref[n] for n in range(Nb)], axis=-1)

    consts = cst_ref[...]                 # (10, L): rows 0..8 tap masks, row 9 = rowstart/W
    mm_dtype = w1_ref.dtype               # bf16 (default) or f32

    def conv3x3(h, w_ref):
        """'same' 3x3 conv on the folded layout.

        One MXU matmul computes all 9 tap responses (stacked-weight im2col),
        then the 9 output row-groups are lane-shifted, boundary-masked and
        accumulated on the VPU/XLU.  Mask/shift commute with the channel
        contraction, so this is exactly the per-tap conv.
        """
        co = w_ref.shape[0] // 9
        g = jnp.dot(w_ref[...], h.astype(mm_dtype),
                    preferred_element_type=f32)                    # (9*co, L)
        z = jnp.zeros((9 * co, pad), f32)
        gp = jnp.concatenate([z, g, z], axis=-1)                   # aligned lane pad
        acc = None
        for k in range(9):
            if offs[k] == 0:                                        # centre tap: mask == 1
                piece = g[k * co:(k + 1) * co, :]
            else:
                piece = (gp[k * co:(k + 1) * co, pad + offs[k]: pad + offs[k] + L]
                         * consts[k:k + 1, :])
            acc = piece if acc is None else acc + piece
        return acc

    def window_sum(v, width, sign):
        """r[..., p] = sum_{j=0}^{width-1} v[..., p + sign*j] (zero fill outside)."""
        result, covered = None, 0
        block, bs, w = v, 1, width
        while w > 0:
            if w & 1:
                if result is None:
                    result, covered = block, bs
                else:
                    result = result + _shift_lanes(block, sign * covered, pad, L)
                    covered += bs
            w >>= 1
            if w:
                block = block + _shift_lanes(block, sign * bs, pad, L)
                bs *= 2
        return result

    # ---- fused forward ----
    h1 = jnp.tanh((x2 - xa2) * s1_ref[...] + t1_ref[...])           # BN1 (folded) + tanh
    a1 = conv3x3(h1, w1_ref)                                        # conv_1 (bias folded into t2)
    h2 = jnp.tanh(a1 * s2_ref[...] + t2_ref[...])                   # BN2 (folded, incl. conv_1 bias) + tanh
    y2 = conv3x3(h2, w2_ref) + b2_ref[...]                          # conv_2             (Cout, L)
    c3 = conv3x3(y2, w3_ref)                                        # conv_3 centre depth slice (1, L)

    # mean over W with keepdim: per-row segment sum via a log2(W) shift tree, then
    # broadcast back from each row-start lane.  consts[9] = (w == 0) / W.
    row_sums = window_sum(c3, W, +1) * consts[9:10, :]
    m = window_sum(row_sums, W, -1) + b3_ref[...]                   # (1, L)

    # ---- un-fold the block and store (aligned lane slices, full-width stores) ----
    for n in range(Nb):
        sl = slice(n * HW, (n + 1) * HW)
        y_ref[n] = y2[:, sl].astype(y_ref.dtype)
        yavg_ref[n] = (xa2[:, sl] + m[:, sl]).astype(yavg_ref.dtype)


def res_cnn2d_block(x_nchw, xavg_nchw, params, *, images_per_block=16,
                    matmul_dtype=jnp.bfloat16):
    """x, x_avg: (N, Cin, H, W) NCHW like the PyTorch module. Returns (y, y_avg) in NCHW."""
    (s1, t1, w1, b1, s2, t2, w2, b2, w3, b3) = params
    N, Cin, H, W = x_nchw.shape
    Cmid = w1.shape[-1]
    Cout = w2.shape[-1]
    HW = H * W
    f32 = jnp.float32

    # Block size: large blocks amortize the ~0.35us per-grid-step overhead, but keep
    # at least 2 grid steps so both v7x TensorCores get work on the "parallel" axis.
    Nb = int(max(1, min(images_per_block, (N + 1) // 2)))
    num_blocks = (N + Nb - 1) // Nb
    Npad = num_blocks * Nb
    L = Nb * HW
    pad = 128 * max(1, -(-(W + 2) // 128))     # lane pad: multiple of 128, >= max tap shift

    x3 = x_nchw.astype(f32).reshape(N, Cin, HW)
    xa3 = xavg_nchw.astype(f32).reshape(N, Cin, HW)
    if Npad != N:
        padn = ((0, Npad - N), (0, 0), (0, 0))
        x3, xa3 = jnp.pad(x3, padn), jnp.pad(xa3, padn)

    # Per-tap flat shifts + boundary masks (tiled across the Nb images of a block).
    # Roll/shift wrap across image boundaries only lands on positions these masks zero.
    offs = tuple(dh * W + dw for (dh, dw) in _TAP_OFFSETS)
    idx = np.arange(HW)
    hh, ww = idx // W, idx % W
    tap_masks = np.stack([
        (((hh + dh) >= 0) & ((hh + dh) < H) & ((ww + dw) >= 0) & ((ww + dw) < W))
        .astype(np.float32) for (dh, dw) in _TAP_OFFSETS])           # (9, HW)
    row_start = ((ww == 0).astype(np.float32) / float(W))[None]       # (1, HW)
    consts = jnp.asarray(np.tile(np.concatenate([tap_masks, row_start], 0), (1, Nb)))

    # Pre-packed per-tap weights stacked along the output-row axis: one matmul per conv.
    w1k = jnp.transpose(w1.astype(f32), (0, 1, 3, 2)).reshape(9 * Cmid, Cin).astype(matmul_dtype)
    w2k = jnp.transpose(w2.astype(f32), (0, 1, 3, 2)).reshape(9 * Cout, Cmid).astype(matmul_dtype)
    w3k = jnp.transpose(w3.astype(f32), (0, 1, 3, 2)).reshape(9, Cout).astype(matmul_dtype)

    s1k = s1.astype(f32).reshape(Cin, 1)
    t1k = t1.astype(f32).reshape(Cin, 1)
    s2k = s2.astype(f32).reshape(Cmid, 1)
    t2k = (t2 + s2 * b1).astype(f32).reshape(Cmid, 1)   # conv_1 bias folded into BN2 shift
    b2k = b2.astype(f32).reshape(Cout, 1)
    b3k = b3.astype(f32).reshape(1, 1)                  # conv_3 bias folded into the residual add

    kernel = functools.partial(_res_block_kernel, Nb, HW, W, offs, pad)

    grid_spec = pltpu.PrefetchScalarGridSpec(
        num_scalar_prefetch=0,
        grid=(num_blocks,),
        in_specs=[
            pl.BlockSpec((Nb, Cin, HW), lambda b: (b, 0, 0)),     # x
            pl.BlockSpec((Nb, Cin, HW), lambda b: (b, 0, 0)),     # x_avg
            pl.BlockSpec((10, L), lambda b: (0, 0)),              # tap masks + rowstart/W
            pl.BlockSpec((9 * Cmid, Cin), lambda b: (0, 0)),      # conv_1 stacked weights
            pl.BlockSpec((9 * Cout, Cmid), lambda b: (0, 0)),     # conv_2 stacked weights
            pl.BlockSpec((9, Cout), lambda b: (0, 0)),            # conv_3 stacked weights
            pl.BlockSpec((Cin, 1), lambda b: (0, 0)),             # BN1 scale (folded)
            pl.BlockSpec((Cin, 1), lambda b: (0, 0)),             # BN1 shift (folded)
            pl.BlockSpec((Cmid, 1), lambda b: (0, 0)),            # BN2 scale
            pl.BlockSpec((Cmid, 1), lambda b: (0, 0)),            # BN2 shift (+ conv_1 bias)
            pl.BlockSpec((Cout, 1), lambda b: (0, 0)),            # conv_2 bias
            pl.BlockSpec((1, 1), lambda b: (0, 0)),               # conv_3 bias
        ],
        out_specs=[
            pl.BlockSpec((Nb, Cout, HW), lambda b: (b, 0, 0)),    # y
            pl.BlockSpec((Nb, Cin, HW), lambda b: (b, 0, 0)),     # y_avg
        ],
    )

    conv_macs = 9 * (Cin * Cmid + Cmid * Cout + Cout)
    cost = pl.CostEstimate(
        flops=int(Npad * HW * (2 * conv_macs + 12 * (Cin + Cmid + Cout))),
        transcendentals=int(Npad * HW * (Cin + Cmid)),
        bytes_accessed=int(4 * Npad * HW * (3 * Cin + Cout) + 4 * 10 * L),
    )

    y3, yavg3 = pl.pallas_call(
        kernel,
        out_shape=(jax.ShapeDtypeStruct((Npad, Cout, HW), f32),
                   jax.ShapeDtypeStruct((Npad, Cin, HW), f32)),
        grid_spec=grid_spec,
        compiler_params=pltpu.CompilerParams(dimension_semantics=("parallel",)),
        cost_estimate=cost,
    )(x3, xa3, consts, w1k, w2k, w3k, s1k, t1k, s2k, t2k, b2k, b3k)

    y = y3[:N].reshape(N, Cout, H, W)
    y_avg = yavg3[:N].reshape(N, Cin, H, W)
    return y, y_avg


def init_params(key, Cin, Cmid, Cout, eps=1e-5):
    """Deterministic synthetic parameters matching the module's __init__ shapes."""
    ks = jax.random.split(key, 14)
    nrm = lambda k, s, sc: sc * jax.random.normal(k, s, jnp.float32)

    # BatchNorm2d(input_filters): gamma/beta + running stats -> folded affine
    g1, be1 = 1.0 + nrm(ks[0], (Cin,), 0.1), nrm(ks[1], (Cin,), 0.1)
    rm1 = nrm(ks[2], (Cin,), 0.1)
    rv1 = 1.0 + 0.1 * jnp.abs(jax.random.normal(ks[3], (Cin,)))
    s1 = g1 / jnp.sqrt(rv1 + eps)
    t1 = be1 - rm1 * s1

    # Conv2d(Cin -> Cmid, k=3)  OIHW -> HWIO
    w1 = jnp.transpose(nrm(ks[4], (Cmid, Cin, 3, 3), 0.2), (2, 3, 1, 0))
    b1 = nrm(ks[5], (Cmid,), 0.1)

    # BatchNorm2d(mid_filters)
    g2, be2 = 1.0 + nrm(ks[6], (Cmid,), 0.1), nrm(ks[7], (Cmid,), 0.1)
    rm2 = nrm(ks[8], (Cmid,), 0.1)
    rv2 = 1.0 + 0.1 * jnp.abs(jax.random.normal(ks[9], (Cmid,)))
    s2 = g2 / jnp.sqrt(rv2 + eps)
    t2 = be2 - rm2 * s2

    # Conv2d(in=input_filters -> out=mid_filters, k=3); requires Cmid == Cin (true at defaults)
    w2 = jnp.transpose(nrm(ks[10], (Cout, Cmid, 3, 3), 0.2), (2, 3, 1, 0))
    b2 = nrm(ks[11], (Cout,), 0.1)

    # Conv3d(output_filters -> 1, k=3): keep only the centre depth slice (see TODO above)
    w3_full = nrm(ks[12], (1, Cout, 3, 3, 3), 0.2)                    # (O=1, I=Cout, D, KH, KW)
    w3 = jnp.transpose(w3_full[0, :, 1, :, :], (1, 2, 0))[..., None]  # (3, 3, Cout, 1) HWIO
    b3 = nrm(ks[13], (1,), 0.1)

    return (s1, t1, w1, b1, s2, t2, w2, b2, w3, b3)


def _reference(x_nchw, xavg_nchw, params):
    """Plain-JAX reference of the same semantics (NHWC internally, exact-precision convs)."""
    (s1, t1, w1, b1, s2, t2, w2, b2, w3, b3) = params
    x = jnp.transpose(x_nchw, (0, 2, 3, 1))
    xa = jnp.transpose(xavg_nchw, (0, 2, 3, 1))
    dn = ("NHWC", "HWIO", "NHWC")
    conv = lambda v, w: lax.conv_general_dilated(
        v, w, (1, 1), "SAME", dimension_numbers=dn, precision=lax.Precision.HIGHEST)
    h1 = jnp.tanh((x - xa) * s1 + t1)
    c1 = conv(h1, w1) + b1
    h2 = jnp.tanh(c1 * s2 + t2)
    y = conv(h2, w2) + b2
    c3 = conv(y, w3) + b3                                            # (N, H, W, 1)
    m = jnp.mean(c3, axis=2, keepdims=True)                          # mean over W, keepdim
    ya = xa + m
    return jnp.transpose(y, (0, 3, 1, 2)), jnp.transpose(ya, (0, 3, 1, 2))


if __name__ == "__main__":
    N, Cin, H, W = 2, 4, 16, 16
    Cmid = Cout = 4   # middle_filters=None -> mid = output_filters

    key = jax.random.PRNGKey(0)
    kx, ka, kp = jax.random.split(key, 3)
    x = jax.random.normal(kx, (N, Cin, H, W), jnp.float32)
    x_avg = jax.random.normal(ka, (N, Cin, H, W), jnp.float32)
    params = init_params(kp, Cin, Cmid, Cout)

    y_ref, ya_ref = _reference(x, x_avg, params)

    # Exact-structure check: f32 MXU path against the plain-JAX reference (tight tol).
    y32, ya32 = res_cnn2d_block(x, x_avg, params, matmul_dtype=jnp.float32)
    jax.block_until_ready((y32, ya32))
    assert y32.shape == (N, Cout, H, W)
    assert ya32.shape == (N, Cin, H, W)
    assert jnp.allclose(y32, y_ref, atol=1e-3, rtol=1e-3), float(jnp.max(jnp.abs(y32 - y_ref)))
    assert jnp.allclose(ya32, ya_ref, atol=1e-3, rtol=1e-3), float(jnp.max(jnp.abs(ya32 - ya_ref)))

    # Default performance path: bf16 MXU operands with f32 accumulation (looser tol).
    y, y_avg = res_cnn2d_block(x, x_avg, params)
    jax.block_until_ready((y, y_avg))
    assert y.shape == (N, Cout, H, W)
    assert y_avg.shape == (N, Cin, H, W)
    assert jnp.allclose(y, y_ref, atol=5e-2, rtol=5e-2), float(jnp.max(jnp.abs(y - y_ref)))
    assert jnp.allclose(y_avg, ya_ref, atol=5e-2, rtol=5e-2), float(jnp.max(jnp.abs(y_avg - ya_ref)))

    print("KERNEL_OK")
</pallas_src>

<mosaic_0001>
module attributes {stable_mosaic.version = 11 : i64} {
  func.func @_res_block_kernel(%arg0: i32, %arg1: memref<1x4x256xf32, #tpu.memory_space<vmem>>, %arg2: memref<1x4x256xf32, #tpu.memory_space<vmem>>, %arg3: memref<10x256xf32, #tpu.memory_space<vmem>>, %arg4: memref<36x4xf32, #tpu.memory_space<vmem>>, %arg5: memref<36x4xf32, #tpu.memory_space<vmem>>, %arg6: memref<9x4xf32, #tpu.memory_space<vmem>>, %arg7: memref<4x1xf32, #tpu.memory_space<vmem>>, %arg8: memref<4x1xf32, #tpu.memory_space<vmem>>, %arg9: memref<4x1xf32, #tpu.memory_space<vmem>>, %arg10: memref<4x1xf32, #tpu.memory_space<vmem>>, %arg11: memref<4x1xf32, #tpu.memory_space<vmem>>, %arg12: memref<1x1xf32, #tpu.memory_space<vmem>>, %arg13: memref<1x4x256xf32, #tpu.memory_space<vmem>>, %arg14: memref<1x4x256xf32, #tpu.memory_space<vmem>>) attributes {dimension_semantics = [#tpu.dimension_semantics<parallel>], iteration_bounds = array<i64: 2>, scalar_prefetch = 0 : i64, scratch_operands = 0 : i64, tpu.core_type = #tpu.core_type<tc>, window_params = [{transform_indices = @transform_0, window_bounds = array<i64: 1, 4, 256>}, {transform_indices = @transform_1, window_bounds = array<i64: 1, 4, 256>}, {pipeline_mode = #tpu.pipeline_mode<synchronous>, transform_indices = @transform_2, window_bounds = array<i64: 10, 256>}, {pipeline_mode = #tpu.pipeline_mode<synchronous>, transform_indices = @transform_3, window_bounds = array<i64: 36, 4>}, {pipeline_mode = #tpu.pipeline_mode<synchronous>, transform_indices = @transform_4, window_bounds = array<i64: 36, 4>}, {pipeline_mode = #tpu.pipeline_mode<synchronous>, transform_indices = @transform_5, window_bounds = array<i64: 9, 4>}, {pipeline_mode = #tpu.pipeline_mode<synchronous>, transform_indices = @transform_6, window_bounds = array<i64: 4, 1>}, {pipeline_mode = #tpu.pipeline_mode<synchronous>, transform_indices = @transform_7, window_bounds = array<i64: 4, 1>}, {pipeline_mode = #tpu.pipeline_mode<synchronous>, transform_indices = @transform_8, window_bounds = array<i64: 4, 1>}, {pipeline_mode = #tpu.pipeline_mode<synchronous>, transform_indices = @transform_9, window_bounds = array<i64: 4, 1>}, {pipeline_mode = #tpu.pipeline_mode<synchronous>, transform_indices = @transform_10, window_bounds = array<i64: 4, 1>}, {pipeline_mode = #tpu.pipeline_mode<synchronous>, transform_indices = @transform_11, window_bounds = array<i64: 1, 1>}, {transform_indices = @transform_12, window_bounds = array<i64: 1, 4, 256>}, {transform_indices = @transform_13, window_bounds = array<i64: 1, 4, 256>}]} {
    %c0 = arith.constant 0 : index
    %c0_0 = arith.constant 0 : index
    %c0_1 = arith.constant 0 : index
    %0 = vector.load %arg1[%c0, %c0_0, %c0_1] : memref<1x4x256xf32, #tpu.memory_space<vmem>>, vector<1x4x256xf32>
    %1 = vector.shape_cast %0 : vector<1x4x256xf32> to vector<4x256xf32>
    %c0_2 = arith.constant 0 : index
    %c0_3 = arith.constant 0 : index
    %c0_4 = arith.constant 0 : index
    %2 = vector.load %arg2[%c0_2, %c0_3, %c0_4] : memref<1x4x256xf32, #tpu.memory_space<vmem>>, vector<1x4x256xf32>
    %3 = vector.shape_cast %2 : vector<1x4x256xf32> to vector<4x256xf32>
    %c0_5 = arith.constant 0 : index
    %c0_6 = arith.constant 0 : index
    %4 = vector.load %arg3[%c0_5, %c0_6] : memref<10x256xf32, #tpu.memory_space<vmem>>, vector<10x256xf32>
    %5 = arith.subf %1, %3 : vector<4x256xf32>
    %c0_7 = arith.constant 0 : index
    %c0_8 = arith.constant 0 : index
    %6 = vector.load %arg7[%c0_7, %c0_8] : memref<4x1xf32, #tpu.memory_space<vmem>>, vector<4x1xf32>
    %7 = vector.broadcast %6 : vector<4x1xf32> to vector<4x256xf32>
    %8 = arith.mulf %5, %7 : vector<4x256xf32>
    %c0_9 = arith.constant 0 : index
    %c0_10 = arith.constant 0 : index
    %9 = vector.load %arg8[%c0_9, %c0_10] : memref<4x1xf32, #tpu.memory_space<vmem>>, vector<4x1xf32>
    %10 = vector.broadcast %9 : vector<4x1xf32> to vector<4x256xf32>
    %11 = arith.addf %8, %10 : vector<4x256xf32>
    %12 = math.tanh %11 : vector<4x256xf32>
    %c0_11 = arith.constant 0 : index
    %c0_12 = arith.constant 0 : index
    %13 = vector.load %arg4[%c0_11, %c0_12] : memref<36x4xf32, #tpu.memory_space<vmem>>, vector<36x4xf32>
    %cst = arith.constant dense<0.000000e+00> : vector<36x256xf32>
    %14 = tpu.matmul %13, %12, %cst {dimension_numbers = #tpu.dot_dimension_numbers<[1], [0], [0], [1], [0, 0, 1, 1], [], []>} : vector<36x4xf32>, vector<4x256xf32>, vector<36x256xf32> -> vector<36x256xf32>
    %cst_13 = arith.constant 0.000000e+00 : f32
    %15 = vector.broadcast %cst_13 : f32 to vector<36x128xf32>
    %16 = tpu.concatenate %15, %14, %15 in 1 : vector<36x128xf32>, vector<36x256xf32>, vector<36x128xf32> -> vector<36x512xf32>
    %17 = vector.extract_strided_slice %16 {offsets = [0, 111], sizes = [4, 256], strides = [1, 1]} : vector<36x512xf32> to vector<4x256xf32>
    %18 = vector.extract_strided_slice %4 {offsets = [0, 0], sizes = [1, 256], strides = [1, 1]} : vector<10x256xf32> to vector<1x256xf32>
    %19 = vector.broadcast %18 : vector<1x256xf32> to vector<4x256xf32>
    %20 = arith.mulf %17, %19 : vector<4x256xf32>
    %21 = vector.extract_strided_slice %16 {offsets = [4, 112], sizes = [4, 256], strides = [1, 1]} : vector<36x512xf32> to vector<4x256xf32>
    %22 = vector.extract_strided_slice %4 {offsets = [1, 0], sizes = [1, 256], strides = [1, 1]} : vector<10x256xf32> to vector<1x256xf32>
    %23 = vector.broadcast %22 : vector<1x256xf32> to vector<4x256xf32>
    %24 = arith.mulf %21, %23 : vector<4x256xf32>
    %25 = arith.addf %20, %24 : vector<4x256xf32>
    %26 = vector.extract_strided_slice %16 {offsets = [8, 113], sizes = [4, 256], strides = [1, 1]} : vector<36x512xf32> to vector<4x256xf32>
    %27 = vector.extract_strided_slice %4 {offsets = [2, 0], sizes = [1, 256], strides = [1, 1]} : vector<10x256xf32> to vector<1x256xf32>
    %28 = vector.broadcast %27 : vector<1x256xf32> to vector<4x256xf32>
    %29 = arith.mulf %26, %28 : vector<4x256xf32>
    %30 = arith.addf %25, %29 : vector<4x256xf32>
    %31 = vector.extract_strided_slice %16 {offsets = [12, 127], sizes = [4, 256], strides = [1, 1]} : vector<36x512xf32> to vector<4x256xf32>
    %32 = vector.extract_strided_slice %4 {offsets = [3, 0], sizes = [1, 256], strides = [1, 1]} : vector<10x256xf32> to vector<1x256xf32>
    %33 = vector.broadcast %32 : vector<1x256xf32> to vector<4x256xf32>
    %34 = arith.mulf %31, %33 : vector<4x256xf32>
    %35 = arith.addf %30, %34 : vector<4x256xf32>
    %36 = vector.extract_strided_slice %14 {offsets = [16, 0], sizes = [4, 256], strides = [1, 1]} : vector<36x256xf32> to vector<4x256xf32>
    %37 = arith.addf %35, %36 : vector<4x256xf32>
    %38 = vector.extract_strided_slice %16 {offsets = [20, 129], sizes = [4, 256], strides = [1, 1]} : vector<36x512xf32> to vector<4x256xf32>
    %39 = vector.extract_strided_slice %4 {offsets = [5, 0], sizes = [1, 256], strides = [1, 1]} : vector<10x256xf32> to vector<1x256xf32>
    %40 = vector.broadcast %39 : vector<1x256xf32> to vector<4x256xf32>
    %41 = arith.mulf %38, %40 : vector<4x256xf32>
    %42 = arith.addf %37, %41 : vector<4x256xf32>
    %43 = vector.extract_strided_slice %16 {offsets = [24, 143], sizes = [4, 256], strides = [1, 1]} : vector<36x512xf32> to vector<4x256xf32>
    %44 = vector.extract_strided_slice %4 {offsets = [6, 0], sizes = [1, 256], strides = [1, 1]} : vector<10x256xf32> to vector<1x256xf32>
    %45 = vector.broadcast %44 : vector<1x256xf32> to vector<4x256xf32>
    %46 = arith.mulf %43, %45 : vector<4x256xf32>
    %47 = arith.addf %42, %46 : vector<4x256xf32>
    %48 = vector.extract_strided_slice %16 {offsets = [28, 144], sizes = [4, 256], strides = [1, 1]} : vector<36x512xf32> to vector<4x256xf32>
    %49 = vector.extract_strided_slice %4 {offsets = [7, 0], sizes = [1, 256], strides = [1, 1]} : vector<10x256xf32> to vector<1x256xf32>
    %50 = vector.broadcast %49 : vector<1x256xf32> to vector<4x256xf32>
    %51 = arith.mulf %48, %50 : vector<4x256xf32>
    %52 = arith.addf %47, %51 : vector<4x256xf32>
    %53 = vector.extract_strided_slice %16 {offsets = [32, 145], sizes = [4, 256], strides = [1, 1]} : vector<36x512xf32> to vector<4x256xf32>
    %54 = vector.extract_strided_slice %4 {offsets = [8, 0], sizes = [1, 256], strides = [1, 1]} : vector<10x256xf32> to vector<1x256xf32>
    %55 = vector.broadcast %54 : vector<1x256xf32> to vector<4x256xf32>
    %56 = arith.mulf %53, %55 : vector<4x256xf32>
    %57 = arith.addf %52, %56 : vector<4x256xf32>
    %c0_14 = arith.constant 0 : index
    %c0_15 = arith.constant 0 : index
    %58 = vector.load %arg9[%c0_14, %c0_15] : memref<4x1xf32, #tpu.memory_space<vmem>>, vector<4x1xf32>
    %59 = vector.broadcast %58 : vector<4x1xf32> to vector<4x256xf32>
    %60 = arith.mulf %57, %59 : vector<4x256xf32>
    %c0_16 = arith.constant 0 : index
    %c0_17 = arith.constant 0 : index
    %61 = vector.load %arg10[%c0_16, %c0_17] : memref<4x1xf32, #tpu.memory_space<vmem>>, vector<4x1xf32>
    %62 = vector.broadcast %61 : vector<4x1xf32> to vector<4x256xf32>
    %63 = arith.addf %60, %62 : vector<4x256xf32>
    %64 = math.tanh %63 : vector<4x256xf32>
    %c0_18 = arith.constant 0 : index
    %c0_19 = arith.constant 0 : index
    %65 = vector.load %arg5[%c0_18, %c0_19] : memref<36x4xf32, #tpu.memory_space<vmem>>, vector<36x4xf32>
    %cst_20 = arith.constant dense<0.000000e+00> : vector<36x256xf32>
    %66 = tpu.matmul %65, %64, %cst_20 {dimension_numbers = #tpu.dot_dimension_numbers<[1], [0], [0], [1], [0, 0, 1, 1], [], []>} : vector<36x4xf32>, vector<4x256xf32>, vector<36x256xf32> -> vector<36x256xf32>
    %cst_21 = arith.constant 0.000000e+00 : f32
    %67 = vector.broadcast %cst_21 : f32 to vector<36x128xf32>
    %68 = tpu.concatenate %67, %66, %67 in 1 : vector<36x128xf32>, vector<36x256xf32>, vector<36x128xf32> -> vector<36x512xf32>
    %69 = vector.extract_strided_slice %68 {offsets = [0, 111], sizes = [4, 256], strides = [1, 1]} : vector<36x512xf32> to vector<4x256xf32>
    %70 = vector.extract_strided_slice %4 {offsets = [0, 0], sizes = [1, 256], strides = [1, 1]} : vector<10x256xf32> to vector<1x256xf32>
    %71 = vector.broadcast %70 : vector<1x256xf32> to vector<4x256xf32>
    %72 = arith.mulf %69, %71 : vector<4x256xf32>
    %73 = vector.extract_strided_slice %68 {offsets = [4, 112], sizes = [4, 256], strides = [1, 1]} : vector<36x512xf32> to vector<4x256xf32>
    %74 = vector.extract_strided_slice %4 {offsets = [1, 0], sizes = [1, 256], strides = [1, 1]} : vector<10x256xf32> to vector<1x256xf32>
    %75 = vector.broadcast %74 : vector<1x256xf32> to vector<4x256xf32>
    %76 = arith.mulf %73, %75 : vector<4x256xf32>
    %77 = arith.addf %72, %76 : vector<4x256xf32>
    %78 = vector.extract_strided_slice %68 {offsets = [8, 113], sizes = [4, 256], strides = [1, 1]} : vector<36x512xf32> to vector<4x256xf32>
    %79 = vector.extract_strided_slice %4 {offsets = [2, 0], sizes = [1, 256], strides = [1, 1]} : vector<10x256xf32> to vector<1x256xf32>
    %80 = vector.broadcast %79 : vector<1x256xf32> to vector<4x256xf32>
    %81 = arith.mulf %78, %80 : vector<4x256xf32>
    %82 = arith.addf %77, %81 : vector<4x256xf32>
    %83 = vector.extract_strided_slice %68 {offsets = [12, 127], sizes = [4, 256], strides = [1, 1]} : vector<36x512xf32> to vector<4x256xf32>
    %84 = vector.extract_strided_slice %4 {offsets = [3, 0], sizes = [1, 256], strides = [1, 1]} : vector<10x256xf32> to vector<1x256xf32>
    %85 = vector.broadcast %84 : vector<1x256xf32> to vector<4x256xf32>
    %86 = arith.mulf %83, %85 : vector<4x256xf32>
    %87 = arith.addf %82, %86 : vector<4x256xf32>
    %88 = vector.extract_strided_slice %66 {offsets = [16, 0], sizes = [4, 256], strides = [1, 1]} : vector<36x256xf32> to vector<4x256xf32>
    %89 = arith.addf %87, %88 : vector<4x256xf32>
    %90 = vector.extract_strided_slice %68 {offsets = [20, 129], sizes = [4, 256], strides = [1, 1]} : vector<36x512xf32> to vector<4x256xf32>
    %91 = vector.extract_strided_slice %4 {offsets = [5, 0], sizes = [1, 256], strides = [1, 1]} : vector<10x256xf32> to vector<1x256xf32>
    %92 = vector.broadcast %91 : vector<1x256xf32> to vector<4x256xf32>
    %93 = arith.mulf %90, %92 : vector<4x256xf32>
    %94 = arith.addf %89, %93 : vector<4x256xf32>
    %95 = vector.extract_strided_slice %68 {offsets = [24, 143], sizes = [4, 256], strides = [1, 1]} : vector<36x512xf32> to vector<4x256xf32>
    %96 = vector.extract_strided_slice %4 {offsets = [6, 0], sizes = [1, 256], strides = [1, 1]} : vector<10x256xf32> to vector<1x256xf32>
    %97 = vector.broadcast %96 : vector<1x256xf32> to vector<4x256xf32>
    %98 = arith.mulf %95, %97 : vector<4x256xf32>
    %99 = arith.addf %94, %98 : vector<4x256xf32>
    %100 = vector.extract_strided_slice %68 {offsets = [28, 144], sizes = [4, 256], strides = [1, 1]} : vector<36x512xf32> to vector<4x256xf32>
    %101 = vector.extract_strided_slice %4 {offsets = [7, 0], sizes = [1, 256], strides = [1, 1]} : vector<10x256xf32> to vector<1x256xf32>
    %102 = vector.broadcast %101 : vector<1x256xf32> to vector<4x256xf32>
    %103 = arith.mulf %100, %102 : vector<4x256xf32>
    %104 = arith.addf %99, %103 : vector<4x256xf32>
    %105 = vector.extract_strided_slice %68 {offsets = [32, 145], sizes = [4, 256], strides = [1, 1]} : vector<36x512xf32> to vector<4x256xf32>
    %106 = vector.extract_strided_slice %4 {offsets = [8, 0], sizes = [1, 256], strides = [1, 1]} : vector<10x256xf32> to vector<1x256xf32>
    %107 = vector.broadcast %106 : vector<1x256xf32> to vector<4x256xf32>
    %108 = arith.mulf %105, %107 : vector<4x256xf32>
    %109 = arith.addf %104, %108 : vector<4x256xf32>
    %c0_22 = arith.constant 0 : index
    %c0_23 = arith.constant 0 : index
    %110 = vector.load %arg11[%c0_22, %c0_23] : memref<4x1xf32, #tpu.memory_space<vmem>>, vector<4x1xf32>
    %111 = vector.broadcast %110 : vector<4x1xf32> to vector<4x256xf32>
    %112 = arith.addf %109, %111 : vector<4x256xf32>
    %c0_24 = arith.constant 0 : index
    %c0_25 = arith.constant 0 : index
    %113 = vector.load %arg6[%c0_24, %c0_25] : memref<9x4xf32, #tpu.memory_space<vmem>>, vector<9x4xf32>
    %cst_26 = arith.constant dense<0.000000e+00> : vector<9x256xf32>
    %114 = tpu.matmul %113, %112, %cst_26 {dimension_numbers = #tpu.dot_dimension_numbers<[1], [0], [0], [1], [0, 0, 1, 1], [], []>} : vector<9x4xf32>, vector<4x256xf32>, vector<9x256xf32> -> vector<9x256xf32>
    %cst_27 = arith.constant 0.000000e+00 : f32
    %115 = vector.broadcast %cst_27 : f32 to vector<9x128xf32>
    %116 = tpu.concatenate %115, %114, %115 in 1 : vector<9x128xf32>, vector<9x256xf32>, vector<9x128xf32> -> vector<9x512xf32>
    %117 = vector.extract_strided_slice %116 {offsets = [0, 111], sizes = [1, 256], strides = [1, 1]} : vector<9x512xf32> to vector<1x256xf32>
    %118 = vector.extract_strided_slice %4 {offsets = [0, 0], sizes = [1, 256], strides = [1, 1]} : vector<10x256xf32> to vector<1x256xf32>
    %119 = arith.mulf %117, %118 : vector<1x256xf32>
    %120 = vector.extract_strided_slice %116 {offsets = [1, 112], sizes = [1, 256], strides = [1, 1]} : vector<9x512xf32> to vector<1x256xf32>
    %121 = vector.extract_strided_slice %4 {offsets = [1, 0], sizes = [1, 256], strides = [1, 1]} : vector<10x256xf32> to vector<1x256xf32>
    %122 = arith.mulf %120, %121 : vector<1x256xf32>
    %123 = arith.addf %119, %122 : vector<1x256xf32>
    %124 = vector.extract_strided_slice %116 {offsets = [2, 113], sizes = [1, 256], strides = [1, 1]} : vector<9x512xf32> to vector<1x256xf32>
    %125 = vector.extract_strided_slice %4 {offsets = [2, 0], sizes = [1, 256], strides = [1, 1]} : vector<10x256xf32> to vector<1x256xf32>
    %126 = arith.mulf %124, %125 : vector<1x256xf32>
    %127 = arith.addf %123, %126 : vector<1x256xf32>
    %128 = vector.extract_strided_slice %116 {offsets = [3, 127], sizes = [1, 256], strides = [1, 1]} : vector<9x512xf32> to vector<1x256xf32>
    %129 = vector.extract_strided_slice %4 {offsets = [3, 0], sizes = [1, 256], strides = [1, 1]} : vector<10x256xf32> to vector<1x256xf32>
    %130 = arith.mulf %128, %129 : vector<1x256xf32>
    %131 = arith.addf %127, %130 : vector<1x256xf32>
    %132 = vector.extract_strided_slice %114 {offsets = [4, 0], sizes = [1, 256], strides = [1, 1]} : vector<9x256xf32> to vector<1x256xf32>
    %133 = arith.addf %131, %132 : vector<1x256xf32>
    %134 = vector.extract_strided_slice %116 {offsets = [5, 129], sizes = [1, 256], strides = [1, 1]} : vector<9x512xf32> to vector<1x256xf32>
    %135 = vector.extract_strided_slice %4 {offsets = [5, 0], sizes = [1, 256], strides = [1, 1]} : vector<10x256xf32> to vector<1x256xf32>
    %136 = arith.mulf %134, %135 : vector<1x256xf32>
    %137 = arith.addf %133, %136 : vector<1x256xf32>
    %138 = vector.extract_strided_slice %116 {offsets = [6, 143], sizes = [1, 256], strides = [1, 1]} : vector<9x512xf32> to vector<1x256xf32>
    %139 = vector.extract_strided_slice %4 {offsets = [6, 0], sizes = [1, 256], strides = [1, 1]} : vector<10x256xf32> to vector<1x256xf32>
    %140 = arith.mulf %138, %139 : vector<1x256xf32>
    %141 = arith.addf %137, %140 : vector<1x256xf32>
    %142 = vector.extract_strided_slice %116 {offsets = [7, 144], sizes = [1, 256], strides = [1, 1]} : vector<9x512xf32> to vector<1x256xf32>
    %143 = vector.extract_strided_slice %4 {offsets = [7, 0], sizes = [1, 256], strides = [1, 1]} : vector<10x256xf32> to vector<1x256xf32>
    %144 = arith.mulf %142, %143 : vector<1x256xf32>
    %145 = arith.addf %141, %144 : vector<1x256xf32>
    %146 = vector.extract_strided_slice %116 {offsets = [8, 145], sizes = [1, 256], strides = [1, 1]} : vector<9x512xf32> to vector<1x256xf32>
    %147 = vector.extract_strided_slice %4 {offsets = [8, 0], sizes = [1, 256], strides = [1, 1]} : vector<10x256xf32> to vector<1x256xf32>
    %148 = arith.mulf %146, %147 : vector<1x256xf32>
    %149 = arith.addf %145, %148 : vector<1x256xf32>
    %cst_28 = arith.constant 0.000000e+00 : f32
    %150 = vector.broadcast %cst_28 : f32 to vector<1x128xf32>
    %151 = tpu.concatenate %150, %149, %150 in 1 : vector<1x128xf32>, vector<1x256xf32>, vector<1x128xf32> -> vector<1x512xf32>
    %152 = vector.extract_strided_slice %151 {offsets = [0, 129], sizes = [1, 256], strides = [1, 1]} : vector<1x512xf32> to vector<1x256xf32>
    %153 = arith.addf %149, %152 : vector<1x256xf32>
    %cst_29 = arith.constant 0.000000e+00 : f32
    %154 = vector.broadcast %cst_29 : f32 to vector<1x128xf32>
    %155 = tpu.concatenate %154, %153, %154 in 1 : vector<1x128xf32>, vector<1x256xf32>, vector<1x128xf32> -> vector<1x512xf32>
    %156 = vector.extract_strided_slice %155 {offsets = [0, 130], sizes = [1, 256], strides = [1, 1]} : vector<1x512xf32> to vector<1x256xf32>
    %157 = arith.addf %153, %156 : vector<1x256xf32>
    %cst_30 = arith.constant 0.000000e+00 : f32
    %158 = vector.broadcast %cst_30 : f32 to vector<1x128xf32>
    %159 = tpu.concatenate %158, %157, %158 in 1 : vector<1x128xf32>, vector<1x256xf32>, vector<1x128xf32> -> vector<1x512xf32>
    %160 = vector.extract_strided_slice %159 {offsets = [0, 132], sizes = [1, 256], strides = [1, 1]} : vector<1x512xf32> to vector<1x256xf32>
    %161 = arith.addf %157, %160 : vector<1x256xf32>
    %cst_31 = arith.constant 0.000000e+00 : f32
    %162 = vector.broadcast %cst_31 : f32 to vector<1x128xf32>
    %163 = tpu.concatenate %162, %161, %162 in 1 : vector<1x128xf32>, vector<1x256xf32>, vector<1x128xf32> -> vector<1x512xf32>
    %164 = vector.extract_strided_slice %163 {offsets = [0, 136], sizes = [1, 256], strides = [1, 1]} : vector<1x512xf32> to vector<1x256xf32>
    %165 = arith.addf %161, %164 : vector<1x256xf32>
    %166 = vector.extract_strided_slice %4 {offsets = [9, 0], sizes = [1, 256], strides = [1, 1]} : vector<10x256xf32> to vector<1x256xf32>
    %167 = arith.mulf %165, %166 : vector<1x256xf32>
    %cst_32 = arith.constant 0.000000e+00 : f32
    %168 = vector.broadcast %cst_32 : f32 to vector<1x128xf32>
    %169 = tpu.concatenate %168, %167, %168 in 1 : vector<1x128xf32>, vector<1x256xf32>, vector<1x128xf32> -> vector<1x512xf32>
    %170 = vector.extract_strided_slice %169 {offsets = [0, 127], sizes = [1, 256], strides = [1, 1]} : vector<1x512xf32> to vector<1x256xf32>
    %171 = arith.addf %167, %170 : vector<1x256xf32>
    %cst_33 = arith.constant 0.000000e+00 : f32
    %172 = vector.broadcast %cst_33 : f32 to vector<1x128xf32>
    %173 = tpu.concatenate %172, %171, %172 in 1 : vector<1x128xf32>, vector<1x256xf32>, vector<1x128xf32> -> vector<1x512xf32>
    %174 = vector.extract_strided_slice %173 {offsets = [0, 126], sizes = [1, 256], strides = [1, 1]} : vector<1x512xf32> to vector<1x256xf32>
    %175 = arith.addf %171, %174 : vector<1x256xf32>
    %cst_34 = arith.constant 0.000000e+00 : f32
    %176 = vector.broadcast %cst_34 : f32 to vector<1x128xf32>
    %177 = tpu.concatenate %176, %175, %176 in 1 : vector<1x128xf32>, vector<1x256xf32>, vector<1x128xf32> -> vector<1x512xf32>
    %178 = vector.extract_strided_slice %177 {offsets = [0, 124], sizes = [1, 256], strides = [1, 1]} : vector<1x512xf32> to vector<1x256xf32>
    %179 = arith.addf %175, %178 : vector<1x256xf32>
    %cst_35 = arith.constant 0.000000e+00 : f32
    %180 = vector.broadcast %cst_35 : f32 to vector<1x128xf32>
    %181 = tpu.concatenate %180, %179, %180 in 1 : vector<1x128xf32>, vector<1x256xf32>, vector<1x128xf32> -> vector<1x512xf32>
    %182 = vector.extract_strided_slice %181 {offsets = [0, 120], sizes = [1, 256], strides = [1, 1]} : vector<1x512xf32> to vector<1x256xf32>
    %183 = arith.addf %179, %182 : vector<1x256xf32>
    %c0_36 = arith.constant 0 : index
    %c0_37 = arith.constant 0 : index
    %184 = vector.load %arg12[%c0_36, %c0_37] : memref<1x1xf32, #tpu.memory_space<vmem>>, vector<1x1xf32>
    %185 = vector.broadcast %184 : vector<1x1xf32> to vector<1x256xf32>
    %186 = arith.addf %183, %185 : vector<1x256xf32>
    %c0_38 = arith.constant 0 : index
    %c0_39 = arith.constant 0 : index
    %c0_40 = arith.constant 0 : index
    %187 = vector.load %arg13[%c0_38, %c0_39, %c0_40] : memref<1x4x256xf32, #tpu.memory_space<vmem>>, vector<1x4x256xf32>
    %188 = vector.shape_cast %187 : vector<1x4x256xf32> to vector<4x256xf32>
    %189 = vector.shape_cast %112 : vector<4x256xf32> to vector<1x4x256xf32>
    tpu.vector_store %arg13[%c0_38, %c0_39, %c0_40], %189 {strides = array<i32>} : memref<1x4x256xf32, #tpu.memory_space<vmem>>, vector<1x4x256xf32>,
    %190 = vector.broadcast %186 : vector<1x256xf32> to vector<4x256xf32>
    %191 = arith.addf %3, %190 : vector<4x256xf32>
    %c0_41 = arith.constant 0 : index
    %c0_42 = arith.constant 0 : index
    %c0_43 = arith.constant 0 : index
    %192 = vector.load %arg14[%c0_41, %c0_42, %c0_43] : memref<1x4x256xf32, #tpu.memory_space<vmem>>, vector<1x4x256xf32>
    %193 = vector.shape_cast %192 : vector<1x4x256xf32> to vector<4x256xf32>
    %194 = vector.shape_cast %191 : vector<4x256xf32> to vector<1x4x256xf32>
    tpu.vector_store %arg14[%c0_41, %c0_42, %c0_43], %194 {strides = array<i32>} : memref<1x4x256xf32, #tpu.memory_space<vmem>>, vector<1x4x256xf32>,
    return
  }
  func.func @transform_0(%arg0: i32) -> (i32, i32, i32) {
    %c0_i32 = arith.constant 0 : i32
    %c0_i32_0 = arith.constant 0 : i32
    %c0_i32_1 = arith.constant 0 : i32
    return %arg0, %c0_i32, %c0_i32_0 : i32, i32, i32
  }
  func.func @transform_1(%arg0: i32) -> (i32, i32, i32) {
    %c0_i32 = arith.constant 0 : i32
    %c0_i32_0 = arith.constant 0 : i32
    %c0_i32_1 = arith.constant 0 : i32
    return %arg0, %c0_i32, %c0_i32_0 : i32, i32, i32
  }
  func.func @transform_2(%arg0: i32) -> (i32, i32) {
    %c0_i32 = arith.constant 0 : i32
    %c0_i32_0 = arith.constant 0 : i32
    %c0_i32_1 = arith.constant 0 : i32
    return %c0_i32, %c0_i32_0 : i32, i32
  }
  func.func @transform_3(%arg0: i32) -> (i32, i32) {
    %c0_i32 = arith.constant 0 : i32
    %c0_i32_0 = arith.constant 0 : i32
    %c0_i32_1 = arith.constant 0 : i32
    return %c0_i32, %c0_i32_0 : i32, i32
  }
  func.func @transform_4(%arg0: i32) -> (i32, i32) {
    %c0_i32 = arith.constant 0 : i32
    %c0_i32_0 = arith.constant 0 : i32
    %c0_i32_1 = arith.constant 0 : i32
    return %c0_i32, %c0_i32_0 : i32, i32
  }
  func.func @transform_5(%arg0: i32) -> (i32, i32) {
    %c0_i32 = arith.constant 0 : i32
    %c0_i32_0 = arith.constant 0 : i32
    %c0_i32_1 = arith.constant 0 : i32
    return %c0_i32, %c0_i32_0 : i32, i32
  }
  func.func @transform_6(%arg0: i32) -> (i32, i32) {
    %c0_i32 = arith.constant 0 : i32
    %c0_i32_0 = arith.constant 0 : i32
    %c0_i32_1 = arith.constant 0 : i32
    return %c0_i32, %c0_i32_0 : i32, i32
  }
  func.func @transform_7(%arg0: i32) -> (i32, i32) {
    %c0_i32 = arith.constant 0 : i32
    %c0_i32_0 = arith.constant 0 : i32
    %c0_i32_1 = arith.constant 0 : i32
    return %c0_i32, %c0_i32_0 : i32, i32
  }
  func.func @transform_8(%arg0: i32) -> (i32, i32) {
    %c0_i32 = arith.constant 0 : i32
    %c0_i32_0 = arith.constant 0 : i32
    %c0_i32_1 = arith.constant 0 : i32
    return %c0_i32, %c0_i32_0 : i32, i32
  }
  func.func @transform_9(%arg0: i32) -> (i32, i32) {
    %c0_i32 = arith.constant 0 : i32
    %c0_i32_0 = arith.constant 0 : i32
    %c0_i32_1 = arith.constant 0 : i32
    return %c0_i32, %c0_i32_0 : i32, i32
  }
  func.func @transform_10(%arg0: i32) -> (i32, i32) {
    %c0_i32 = arith.constant 0 : i32
    %c0_i32_0 = arith.constant 0 : i32
    %c0_i32_1 = arith.constant 0 : i32
    return %c0_i32, %c0_i32_0 : i32, i32
  }
  func.func @transform_11(%arg0: i32) -> (i32, i32) {
    %c0_i32 = arith.constant 0 : i32
    %c0_i32_0 = arith.constant 0 : i32
    %c0_i32_1 = arith.constant 0 : i32
    return %c0_i32, %c0_i32_0 : i32, i32
  }
  func.func @transform_12(%arg0: i32) -> (i32, i32, i32) {
    %c0_i32 = arith.constant 0 : i32
    %c0_i32_0 = arith.constant 0 : i32
    %c0_i32_1 = arith.constant 0 : i32
    return %arg0, %c0_i32, %c0_i32_0 : i32, i32, i32
  }
  func.func @transform_13(%arg0: i32) -> (i32, i32, i32) {
    %c0_i32 = arith.constant 0 : i32
    %c0_i32_0 = arith.constant 0 : i32
    %c0_i32_1 = arith.constant 0 : i32
    return %arg0, %c0_i32, %c0_i32_0 : i32, i32, i32
  }
}

</mosaic_0001>

<bundles_post_ra>
// kernel: tpu_custom_call.1
= control target key start
LH: loop header
LB: loop body
LE: loop exit
PB: predicated region body
PF: predicated region fallthrough
CT: control target
= control target key end

     0   :  { %s2827_s0 = inlined_call_operand.vmem [shape: f32[2,4,256], index: 0, kind: input, shape index: {}]   ;;  %s2828_s1 = inlined_call_operand.vmem [shape: f32[2,4,256], index: 1, kind: input, shape index: {}]   ;;  %s2829_s2 = inlined_call_operand.vmem [shape: f32[10,256], index: 2, kind: input, shape index: {}]   ;;  %s2830_s3 = inlined_call_operand.vmem [shape: f32[36,4], index: 3, kind: input, shape index: {}]   ;;  %s2831_s4 = inlined_call_operand.vmem [shape: f32[36,4], index: 4, kind: input, shape index: {}]   ;;  %s2832_s5 = inlined_call_operand.vmem [shape: f32[9,4], index: 5, kind: input, shape index: {}]   ;;  %s2833_s6 = inlined_call_operand.vmem [shape: f32[4,1], index: 6, kind: input, shape index: {}]   ;;  %s2834_s7 = inlined_call_operand.vmem [shape: f32[4,1], index: 7, kind: input, shape index: {}]   ;;  %s2835_s8 = inlined_call_operand.vmem [shape: f32[4,1], index: 8, kind: input, shape index: {}]   ;;  %s2836_s9 = inlined_call_operand.vmem [shape: f32[4,1], index: 9, kind: input, shape index: {}]   ;;  %s2837_s10 = inlined_call_operand.vmem [shape: f32[4,1], index: 10, kind: input, shape index: {}]   ;;  %s2838_s11 = inlined_call_operand.<no memory space> [shape: f32[1,1], index: 11, kind: input, shape index: {}]   ;;  %s2839_s12 = inlined_call_operand.hbm [shape: f32[2,4,256], index: 12, kind: output, shape index: {0}]   ;;  %s2840_s13 = inlined_call_operand.hbm [shape: f32[2,4,256], index: 13, kind: output, shape index: {1}]  }
   0x1   :  { %2868 = sst [smem:[#allocation9_spill]] %s2827_s0  ;;  %v19_v0 = vstv %s2838_s11 }
   0x2   :  { %2869 = sst [smem:[#allocation10_spill]] %s2828_s1  ;;  %20 = vst [vmem:[#allocation2] sm:$0x1] %v19_v0 }
   0x3   :  { %2870 = sst [smem:[#allocation11_spill]] %s2830_s3 }
   0x4   :  { %2871 = sst [smem:[#allocation12_spill]] %s2831_s4 }
   0x5   :  { %2872 = sst [smem:[#allocation13_spill]] %s2833_s6 }
   0x6   :  { %2873 = sst [smem:[#allocation14_spill]] %s2834_s7 }
   0x7   :  { %21 = vsyncpa [#allocation4], 0 }
   0x8   :  { %23 = vsyncpa [#allocation4 + $0x1], 0 }
   0x9   :  { %24 = vsyncpa [#allocation6], 0 }
   0xa   :  { %26 = vsyncpa [#allocation6 + $0x1], 0  ;;  %s2172_s27 = smov 0   ;;  %s2174_s28 = smov 0  }
   0xb   :  { %s2176_s29 = smov 0   ;;  %s2178_s30 = smov 0  }
   0xc LB: > { %s2193_s11 = sadd.s32 4294967295, %s2076_s30   ;;  %s1849_s14 = sadd.s32 4294967294, %s2076_s30   ;;  %s2076_s30 = sphi %s2178_s30, %s2899_s30   ;;  %s2072_s29 = sphi %s2176_s29, %s2898_s29   ;;  %s2068_s28 = sphi %s2174_s28, %s2897_s28   ;;  %s2064_s27 = sphi %s2172_s27, %s2896_s27  }
   0xd   : > { %s2197_s15 = sadd.s32 1, %s2076_s30   ;;  %s301_s16 = sadd.s32 1, %s2072_s29 }
   0xe   : > { %s298_s17 = ssub.s32 %s2076_s30, %s2197_s15  ;;  %p311_p0 = scmp.ne.s32.totalorder %s2072_s29, %s2068_s28 }
   0xf   : > { %p299_p1 = scmp.eq.s32.totalorder %s298_s17, 0  ;;  %p312_p2 = scmp.eq.s32.totalorder %s2193_s11, 1 }
  0x10   : > { %p317_p3 = scmp.ne.s32.totalorder %s2068_s28, %s2064_s27  ;;  %p318_p4 = scmp.eq.s32.totalorder %s1849_s14, 1 }
  0x11   : > { %s2208_s18 = scalar_select %p299_p1, %s2072_s29, %s301_s16  }
  0x12   : > { %p2210_p5 = por %p312_p2, %p311_p0  ;;  %p2214_p6 = por %p318_p4, %p317_p3 }
  0x13   : > { %p1852_p7 = scmp.ge.s32.totalorder %s2076_s30, 1  ;;  %p408_p8 = scmp.lt.s32.totalorder %s2076_s30, 3 }
  0x15   : > { %p409_p9 = pnand %p1852_p7, %p408_p8 }
  0x16   : > { %s2876_s6 = sld [smem:[#allocation13_spill]] (!%p409_p9)  ;;  %s2841_s25 = smov (!%p409_p9), 112  }
  0x17   : > { %412 = sbr.rel (%p409_p9) target bundleno = 3310 (0xcee), region = 68  ;;  %s2877_s7 = sld [smem:[#allocation14_spill]] (!%p409_p9) }
  0x18   : > { %s2843_s21 = smov (!%p409_p9), 127   ;;  %s2851_s22 = smov (!%p409_p9), 113  }
  0x19   : > { %s2845_s23 = smov (!%p409_p9), 1   ;;  %p462_p10 = scmp.lt.s32.totalorder (!%p409_p9), %s2193_s11, 1 }
  0x1a   : > { %s2849_s24 = smov (!%p409_p9), 15   ;;  %s2878_s0 = sld [smem:[#allocation9_spill]] (!%p409_p9) }
  0x1b   : > { %s2879_s1 = sld [smem:[#allocation10_spill]] (!%p409_p9)  ;;  %s2880_s16 = smov (!%p409_p9), 1  }
  0x1c   : > { %v479_v1 = vld [vmem:[%s2876_s6] sm:$0xf]  ;;  %v2078_v3 = vmov 0   ;;  %v2236_v6 = vld [vmem:[%s2829_s2 + $0x8] sm:$0xff]  ;;  %s463_s26 = scalar_select %p462_p10, %s2193_s11, 1  ;;  %vm527_vm0 = vcmask 1043456  }
  0x1d   : > { %v2226_v2 = vld [vmem:[%s2829_s2] sm:$0xff]  ;;  %1968 = vset.pattern.permute.xlu0 %v2078_v3  ;;  %1969 = vset.pattern.permute.xlu2 %v2078_v3  ;;  %v613_v7 = vperm.slane %v2236_v6, 1  ;;  %v684_v9 = vperm.slane %v2236_v6, 3  ;;  %v732_v11 = vperm.slane %v2236_v6, 5  ;;  %v650_v13 = vperm.slane %v2236_v6, 2  ;;  %s2881_s3 = sld [smem:[#allocation11_spill]] }
  0x1e   : > { %v612_v4 = vperm.slane %v2226_v2, 1  ;;  %482 = vperm.xlu0 %1968, %v479_v1   ;;  %1970 = vset.pattern.permute.xlu1 %v2078_v3  ;;  %v490_v5 = vld [vmem:[%s2877_s7] sm:$0xf]  ;;  %v683_v8 = vperm.slane %v2226_v2, 3  ;;  %v649_v10 = vperm.slane %v2226_v2, 2  ;;  %v768_v12 = vperm.slane %v2226_v2, 6 }
  0x1f   : > { %s1897_s14 = sshll.u32 %s463_s26, 3  ;;  %v2084_v14 = vmov 839922192   ;;  %v803_v16 = vperm.slane %v2236_v6, 7  ;;  %v731_v17 = vperm.slane %v2226_v2, 5  ;;  %v802_v18 = vperm.slane %v2226_v2, 7 }
  0x20   : > { %616 = vrot.lane.b32.xlu1 %v612_v4, %s2841_s25  ;;  %653 = vrot.lane.b32.xlu2 %v649_v10, %s2851_s22  ;;  %v485_v15 = vunpack.c.l.s4 %v2084_v14  ;;  %s2847_s26 = smov 16   ;;  %v596_v25 = vperm.slane %v2226_v2, 0  ;;  %v769_v26 = vperm.slane %v2236_v6, 6  ;;  %v2274_v27 = vld [vmem:[%s2829_s2 + $0x18] sm:$0x3]  ;;  %vm511_vm1 = vcmask 31744  }
  0x21   : > { %s2260_s6 = scalar_lea.vmem %s2879_s1, %s1897_s14  ;;  %v840_v29 = vperm.slane %v2274_v27, 0  ;;  %v2283_v34 = vld [vmem:[%s2829_s2 + $0x10] sm:$0x3]  ;;  %v597_v40 = vperm.slane %v2236_v6, 0  ;;  %s2865_s17 = smov 96   ;;  %vm620_vm2 = vcmask 916480  }
  0x22   : > { %v486_v20 = vunpack.c.0.s8 %v485_v15  ;;  %v473_v22 = vld [vmem:[%s2260_s6] sm:$0xff]  ;;  %v839_v35 = vperm.slane %v2283_v34, 0  ;;  %vm847_vm3 = vcmask 138240   ;;  %vm657_vm4 = vcmask 924672   ;;  %s2885_s4 = sld [smem:[#allocation12_spill]]  ;;  %s2892_s1 = smov 113  }
  0x23   : > { %v502_v36 = vld [vmem:[%s2881_s3] sm:$0xff]  ;;  %v503_v41 = vld [vmem:[%s2881_s3 + $0x8] sm:$0xff]  ;;  %v504_v42 = vld [vmem:[%s2881_s3 + $0x10] sm:$0xff]  ;;  %vm640_vm5 = vcmask 1039360   ;;  %vm739_vm6 = vcmask 7168   ;;  %vm776_vm7 = vcmask 121856  }
  0x24   : > { %v506_v37 = vld [vmem:[%s2881_s3 + $0x20] sm:$0xf]  ;;  %v505_v43 = vld [vmem:[%s2881_s3 + $0x18] sm:$0xff]  ;;  %vm810_vm8 = vcmask 130048   ;;  %vm674_vm9 = vcmask 1031168   ;;  %vm604_vm10 = vcmask 908288  }
  0x25   : > { %vm759_vm11 = vcmask 900096   ;;  %vm793_vm12 = vcmask 785408   ;;  %vm830_vm13 = vcmask 777216   ;;  %vm864_vm14 = vcmask 769024   ;;  %s2893_s3 = smov 15   ;;  %s2094_s7 = smov 109  }
  0x26   : > { %493 = vperm.xlu0 %1968, %v490_v5   ;;  %vm1493_vm15 = vcmask 891904  }
  0x28   : > { %618 = vrot.lane.b32.xlu1 %v613_v7, %s2841_s25  ;;  %655 = vrot.lane.b32.xlu2 %v650_v13, %s2851_s22  ;;  %s466_s25 = scalar_lea.vmem %s2878_s0, %s1897_s14  ;;  %s2853_s14 = smov 17  }
  0x29   : > { %v472_v21 = vld [vmem:[%s466_s25] sm:$0xff]  ;;  %s2855_s25 = smov 111   ;;  %s2857_s22 = smov 126  }
  0x2a   : > { %v478_v23 = vsub.f32 %v472_v21, %v473_v22  ;;  %s2886_s0 = smov 126  }
  0x2e   : > { %687 = vrot.lane.b32.xlu0 %v683_v8, %s2843_s21 }
  0x30   : > { %689 = vrot.lane.b32.xlu1 %v684_v9, %s2843_s21  ;;  %735 = vrot.lane.b32.xlu2 %v731_v17, %s2880_s16  ;;  %s2861_s21 = smov 110  }
  0x36   : > { %737 = vrot.lane.b32.xlu0 %v732_v11, %s2845_s23  ;;  %s2863_s23 = smov 95  }
  0x38   : > { %772 = vrot.lane.b32.xlu1 %v768_v12, %s2849_s24  ;;  %774 = vrot.lane.b32.xlu2 %v769_v26, %s2849_s24  ;;  %s2882_s24 = smov 127  }
  0x3e   : > { %806 = vrot.lane.b32.xlu0 %v802_v18, %s2847_s26 }
  0x40   : > { %808 = vrot.lane.b32.xlu1 %v803_v16, %s2847_s26  ;;  %843 = vrot.lane.b32.xlu2 %v839_v35, %s2853_s14  ;;  %s2883_s26 = smov 112  }
  0x46   : > { %845 = vrot.lane.b32.xlu0 %v840_v29, %s2853_s14  ;;  %s2859_s14 = smov 94  }
  0x48   : > { %600 = vrot.lane.b32.xlu1 %v596_v25, %s2855_s25  ;;  %602 = vrot.lane.b32.xlu2 %v597_v40, %s2855_s25 }
  0x7a   : > { %v654_v44 = vpop.permute.xlu2 %653 }
  0x7b   : > { %v662_v45 = vmul.f32 0.0, %v654_v44 }
  0x7d   : > { %668 = vrot.lane.b32.xlu0 %v662_v45, %s2857_s22 }
  0x82   : > { %v2319_v49 = vpop.permute.xlu2 %655 }
  0x8a   : > { %v2324_v51 = vpop.permute.xlu2 %735 }
  0x90   : > { %v483_v19 = vpop.permute.xlu0 %482 }
  0x91   : > { %v487_v24 = vperm.slane %v483_v19, %v486_v20  ;;  %v2362_v19 = vsel %vm657_vm4, %v654_v44, %v2319_v49 }
  0x92   : > { %v617_v46 = vpop.permute.xlu1 %616  ;;  %v2329_v56 = vpop.permute.xlu2 %774 }
  0x93   : > { %v489_v30 = vmul.f32 %v487_v24, %v478_v23  ;;  %v625_v47 = vmul.f32 0.0, %v617_v46  ;;  %v783_v57 = vmul.f32 0.0, %v2329_v56 }
  0x95   : > { %v631_v48 = vrot.slane %v625_v47, 4  ;;  %791 = vrot.lane.b32.xlu1 %v783_v57, %s2865_s17 }
  0x97   : > { %634 = vrot.lane.b32.xlu0 %v631_v48, %s2882_s24 }
  0x98   : > { %v494_v28 = vpop.permute.xlu0 %493 }
  0x99   : > { %v498_v31 = vperm.slane %v494_v28, %v486_v20 }
  0x9a   : > { %v2322_v50 = vpop.permute.xlu1 %618  ;;  %v2351_v11 = vpop.permute.xlu2 %843 }
  0x9b   : > { %v500_v32 = vadd.f32 %v498_v31, %v489_v30  ;;  %v2343_v4 = vsel %vm620_vm2, %v617_v46, %v2322_v50  ;;  %v882_v46 = vld [vmem:[%s2836_s9] sm:$0xf] }
  0x9d   : > { %1971 = vtanh.f32 %v500_v32 }
  0xa0   : > { %v688_v52 = vpop.permute.xlu0 %687 }
  0xa1   : > { %v695_v53 = vmul.f32 0.0, %v688_v52 }
  0xa2   : > { %v2326_v55 = vpop.permute.xlu1 %689 }
  0xa3   : > { %v1972_v33 = vpop.eup %1971  ;;  %v701_v54 = vrot.slane %v695_v53, 4  ;;  %v2370_v22 = vsel %vm640_vm5, %v688_v52, %v2326_v55  ;;  %v873_v52 = vld [vmem:[%s2835_s8] sm:$0xf] }
  0xa4   : > { %508 = vst [vmem:[#allocation1] ss:$2 sm:$0xff] %v1972_v33 }
  0xa5   : > { %704 = vrot.lane.b32.xlu0 %v701_v54, %s2883_s26  ;;  %v2413_v54 = vpop.permute.xlu2 %602 }
  0xa8   : > { %v738_v58 = vpop.permute.xlu0 %737 }
  0xa9   : > { %v746_v59 = vmul.f32 0.0, %v738_v58  ;;  %v2377_v28 = vsel %vm739_vm6, %v2324_v51, %v738_v58 }
  0xaa   : > { %v2333_v60 = vpop.permute.xlu1 %772 }
  0xab   : > { %v509_v38 = vld.sshfl [vmem:[#allocation1] sm:$0xff pattern:$0x75316420]  ;;  %v510_v39 = vld.sshfl [vmem:[#allocation1 + $0x8] sm:$0xff pattern:$0x75316420] }
  0xac   : > { %1859 = vmatpush.msk.msra.mxu0 %vm527_vm0, %v509_v38  ;;  %1901 = vmatpush.msk.msra.mxu2 %vm527_vm0, %v509_v38  ;;  %v752_v61 = vrot.slane %v746_v59, 4 }
  0xad   : > { %1865 = vmatpush.msk.msra.mxu1 %vm527_vm0, %v510_v39  ;;  %1902 = vmatpush.msk.msra.mxu3 %vm527_vm0, %v510_v39 }
  0xae   : > { %1860 = vmatmul.msk.f32.vlgmr.msra.gmra.mxu0 %vm511_vm1, %v502_v36  ;;  %1864 = vmatmul.msk.f32.vlgmr.msra.gmra.mxu2 %vm511_vm1, %v506_v37 }
  0xaf   : > { %1866 = vmatmul.msk.f32.vlgmr.msra.gmra.mxu1 %vm511_vm1, %v502_v36  ;;  %1870 = vmatmul.msk.f32.vlgmr.msra.gmra.mxu3 %vm511_vm1, %v506_v37  ;;  %v2390_v36 = vsel %vm776_vm7, %v2333_v60, %v2329_v56 }
  0xb0   : > { %757 = vrot.lane.b32.xlu1 %v752_v61, %s2861_s21  ;;  %v2337_v1 = vpop.permute.xlu0 %806 }
  0xb2   : > { %v809_v62 = vpop.permute.xlu1 %808 }
  0xb3   : > { %v817_v63 = vmul.f32 0.0, %v809_v62  ;;  %v2397_v40 = vsel %vm810_vm8, %v2337_v1, %v809_v62 }
  0xb5   : > { %v823_v0 = vrot.slane %v817_v63, 4 }
  0xb6   : > { %1861 = vmatmul.msk.f32.gmra.mxu0 %vm511_vm1, %v503_v41 }
  0xb7   : > { %1867 = vmatmul.msk.f32.gmra.mxu1 %vm511_vm1, %v503_v41 }
  0xb8   : > { %828 = vrot.lane.b32.xlu1 %v823_v0, %s2863_s23  ;;  %v846_v9 = vpop.permute.xlu0 %845 }
  0xb9   : > { %v2356_v13 = vsel %vm847_vm3, %v2351_v11, %v846_v9  ;;  %v854_v39 = vmul.f32 0.0, %v846_v9 }
  0xba   : > { %v601_v53 = vpop.permute.xlu1 %600 }
  0xbe   : > { %1862 = vmatmul.msk.f32.gmra.mxu0 %vm511_vm1, %v504_v42 }
  0xbf   : > { %1868 = vmatmul.msk.f32.gmra.mxu1 %vm511_vm1, %v504_v42 }
  0xc6   : > { %1863 = vmatmul.msk.f32.gmra.mxu0 %vm511_vm1, %v505_v43 }
  0xc7   : > { %1869 = vmatmul.msk.f32.gmra.mxu1 %vm511_vm1, %v505_v43 }
  0xef   : > { %v2417_v58 = vpop.permute.xlu0 %668 }
 0x107   : > { %v2415_v56 = vpop.permute.xlu1 %791 }
 0x109   : > { %v2423_v62 = vpop.permute.xlu0 %634 }
 0x122   : > { %v2419_v59 = vpop.permute.xlu1 %757 }
 0x12a   : > { %v2425_v63 = vpop.permute.xlu1 %828 }
 0x12b   : > { %v2339_v3 = vpop.f32.mrf.mxu0 }
 0x12c   : > { %v626_v5 = vmul.f32 %v2343_v4, %v2339_v3  ;;  %v2347_v7 = vpop.f32.mrf.mxu1 }
 0x12d   : > { %v627_v8 = vmul.f32 %v2322_v50, %v2347_v7 }
 0x12e   : > { %v632_v10 = vrot.slane %v626_v5, 4  ;;  %v2427_v5 = vpop.permute.xlu0 %704 }
 0x12f   : > { %v633_v12 = vrot.slane %v627_v8, 4 }
 0x130   : > { %636 = vrot.lane.b32.xlu1 %v632_v10, %s2882_s24 }
 0x131   : > { %638 = vrot.lane.b32.xlu2 %v633_v12, %s2882_s24  ;;  %v561_v17 = vpop.f32.mrf.mxu2 }
 0x132   : > { %v593_v14 = vpop.f32.mrf.mxu3  ;;  %v852_v21 = vmul.f32 %v2351_v11, %v561_v17  ;;  %v2431_v17 = vmul.f32 0.0, %v601_v53 }
 0x133   : > { %v853_v15 = vmul.f32 %v2356_v13, %v593_v14  ;;  %v552_v16 = vpop.f32.mrf.mxu0 }
 0x134   : > { %v584_v18 = vpop.f32.mrf.mxu1  ;;  %v663_v20 = vmul.f32 %v2362_v19, %v552_v16  ;;  %v696_v23 = vmul.f32 %v2370_v22, %v552_v16 }
 0x135   : > { %860 = vrot.lane.b32.xlu0 %v853_v15, %s2859_s14  ;;  %v664_v29 = vmul.f32 %v2319_v49, %v584_v18  ;;  %v697_v31 = vmul.f32 %v2326_v55, %v584_v18 }
 0x136   : > { %v702_v26 = vrot.slane %v696_v23, 4 }
 0x137   : > { %v703_v33 = vrot.slane %v697_v31, 4 }
 0x138   : > { %670 = vrot.lane.b32.xlu1 %v663_v20, %s2857_s22 }
 0x139   : > { %858 = vrot.lane.b32.xlu2 %v852_v21, %s2859_s14  ;;  %v2437_v21 = vsel %vm604_vm10, %v601_v53, %v2413_v54 }
 0x13b   : > { %v555_v24 = vpop.f32.mrf.mxu0 }
 0x13c   : > { %v587_v25 = vpop.f32.mrf.mxu1  ;;  %v744_v37 = vmul.f32 %v2324_v51, %v555_v24 }
 0x13d   : > { %720 = vrot.lane.b32.xlu0 %v555_v24, %s2855_s25  ;;  %v745_v30 = vmul.f32 %v2377_v28, %v587_v25 }
 0x13e   : > { %v750_v41 = vrot.slane %v744_v37, 4 }
 0x13f   : > { %v751_v32 = vrot.slane %v745_v30, 4  ;;  %v611_v30 = vmul.f32 %v2413_v54, %v2347_v7 }
 0x140   : > { %706 = vrot.lane.b32.xlu1 %v702_v26, %s2883_s26 }
 0x141   : > { %672 = vrot.lane.b32.xlu2 %v664_v29, %s2857_s22  ;;  %v610_v29 = vmul.f32 %v2437_v21, %v2339_v3  ;;  %s2889_s22 = smov 96  }
 0x143   : > { %v558_v44 = vpop.f32.mrf.mxu0 }
 0x144   : > { %v590_v35 = vpop.f32.mrf.mxu1  ;;  %v781_v45 = vmul.f32 %v2333_v60, %v558_v44  ;;  %v815_v47 = vmul.f32 %v2337_v1, %v558_v44 }
 0x145   : > { %755 = vrot.lane.b32.xlu0 %v751_v32, %s2861_s21  ;;  %v782_v38 = vmul.f32 %v2390_v36, %v590_v35  ;;  %v816_v42 = vmul.f32 %v2397_v40, %v590_v35 }
 0x146   : > { %v821_v48 = vrot.slane %v815_v47, 4 }
 0x147   : > { %v822_v43 = vrot.slane %v816_v42, 4 }
 0x148   : > { %722 = vrot.lane.b32.xlu1 %v587_v25, %s2855_s25  ;;  %s2884_s25 = smov 17  }
 0x149   : > { %708 = vrot.lane.b32.xlu2 %v703_v33, %s2883_s26 }
 0x14d   : > { %789 = vrot.lane.b32.xlu0 %v782_v38, %s2865_s17 }
 0x150   : > { %862 = vrot.lane.b32.xlu1 %v854_v39, %s2859_s14  ;;  %s2888_s14 = smov 110  }
 0x151   : > { %753 = vrot.lane.b32.xlu2 %v750_v41, %s2861_s21  ;;  %s2891_s21 = smov 94  }
 0x155   : > { %826 = vrot.lane.b32.xlu0 %v822_v43, %s2863_s23 }
 0x159   : > { %787 = vrot.lane.b32.xlu2 %v781_v45, %s2865_s17  ;;  %s2887_s17 = smov 111  }
 0x15d   : > { %885 = vperm.xlu0 %1968, %v882_v46  }
 0x161   : > { %824 = vrot.lane.b32.xlu2 %v821_v48, %s2863_s23  ;;  %s2890_s23 = smov 95  }
 0x169   : > { %876 = vperm.xlu2 %1969, %v873_v52  }
 0x18b   : > { %v639_v57 = vpop.permute.xlu2 %638 }
 0x18c   : > { %v648_v37 = vadd.f32 %v639_v57, %v611_v30 }
 0x193   : > { %v2421_v61 = vpop.permute.xlu2 %858 }
 0x19b   : > { %v673_v0 = vpop.permute.xlu2 %672 }
 0x19c   : > { %v682_v42 = vadd.f32 %v673_v0, %v648_v37 }
 0x1a2   : > { %v637_v8 = vpop.permute.xlu1 %636 }
 0x1a3   : > { %v709_v9 = vpop.permute.xlu2 %708  ;;  %v641_v16 = vsel %vm640_vm5, %v2423_v62, %v637_v8  ;;  %v642_v25 = vsel %vm640_vm5, %v637_v8, %v639_v57 }
 0x1a4   : > { %v646_v23 = vadd.f32 %v641_v16, %v2431_v17  ;;  %v647_v38 = vadd.f32 %v642_v25, %v610_v29  ;;  %v717_v46 = vadd.f32 %v709_v9, %v682_v42 }
 0x1a7   : > { %v861_v10 = vpop.permute.xlu0 %860 }
 0x1aa   : > { %v671_v12 = vpop.permute.xlu1 %670 }
 0x1ab   : > { %v754_v14 = vpop.permute.xlu2 %753  ;;  %v675_v20 = vsel %vm674_vm9, %v2417_v58, %v671_v12  ;;  %v676_v33 = vsel %vm674_vm9, %v671_v12, %v673_v0 }
 0x1ac   : > { %v680_v26 = vadd.f32 %v675_v20, %v646_v23  ;;  %v681_v43 = vadd.f32 %v676_v33, %v647_v38 }
 0x1af   : > { %v721_v15 = vpop.permute.xlu0 %720 }
 0x1b2   : > { %v707_v18 = vpop.permute.xlu1 %706 }
 0x1b3   : > { %v710_v24 = vsel %vm620_vm2, %v2427_v5, %v707_v18  ;;  %v788_v31 = vpop.permute.xlu2 %787  ;;  %v711_v39 = vsel %vm620_vm2, %v707_v18, %v709_v9 }
 0x1b4   : > { %v715_v35 = vadd.f32 %v710_v24, %v680_v26  ;;  %v716_v3 = vadd.f32 %v711_v39, %v681_v43 }
 0x1b6   : > { %v728_v44 = vadd.f32 %v721_v15, %v715_v35 }
 0x1b7   : > { %v756_v32 = vpop.permute.xlu0 %755 }
 0x1b8   : > { %v765_v52 = vadd.f32 %v754_v14, %v728_v44  ;;  %v760_v57 = vsel %vm759_vm11, %v754_v14, %v756_v32  ;;  %v761_v8 = vsel %vm759_vm11, %v756_v32, %v2419_v59 }
 0x1ba   : > { %v723_v41 = vpop.permute.xlu1 %722  ;;  %v799_v16 = vadd.f32 %v788_v31, %v765_v52 }
 0x1bb   : > { %v724_v45 = vsel %vm604_vm10, %v721_v15, %v723_v41  ;;  %v730_v7 = vadd.f32 %v723_v41, %v717_v46  ;;  %v825_v53 = vpop.permute.xlu2 %824 }
 0x1bc   : > { %v729_v47 = vadd.f32 %v724_v45, %v716_v3  ;;  %v836_v25 = vadd.f32 %v825_v53, %v799_v16  ;;  %v898_v16 = vld [vmem:[%s2885_s4 + $0x20] sm:$0xf] }
 0x1bd   : > { %v767_v12 = vadd.f32 %v761_v8, %v730_v7  ;;  %v895_v8 = vld [vmem:[%s2885_s4 + $0x8] sm:$0xff] }
 0x1be   : > { %v766_v0 = vadd.f32 %v760_v57, %v729_v47  ;;  %v870_v38 = vadd.f32 %v2421_v61, %v836_v25 }
 0x1bf   : > { %v790_v48 = vpop.permute.xlu0 %789 }
 0x1c0   : > { %v794_v18 = vsel %vm793_vm12, %v788_v31, %v790_v48  ;;  %v795_v9 = vsel %vm793_vm12, %v790_v48, %v2415_v56  ;;  %v865_v31 = vsel %vm864_vm14, %v2421_v61, %v861_v10  ;;  %v894_v48 = vld [vmem:[%s2885_s4] sm:$0xff] }
 0x1c1   : > { %v800_v15 = vadd.f32 %v794_v18, %v766_v0  ;;  %v801_v20 = vadd.f32 %v795_v9, %v767_v12  ;;  %v896_v12 = vld [vmem:[%s2885_s4 + $0x10] sm:$0xff]  ;;  %v897_v0 = vld [vmem:[%s2885_s4 + $0x18] sm:$0xff]  ;;  %s2894_s4 = smov 16  }
 0x1c2   : > { %v2456_v23 = vpop.permute.xlu1 %862 }
 0x1c3   : > { %v866_v32 = vsel %vm864_vm14, %v861_v10, %v2456_v23  ;;  %v877_v33 = vpop.permute.xlu2 %876 }
 0x1c4   : > { %v879_v42 = vmul.f32 %v877_v33, %v870_v38 }
 0x1c7   : > { %v827_v24 = vpop.permute.xlu0 %826 }
 0x1c8   : > { %v831_v14 = vsel %vm830_vm13, %v825_v53, %v827_v24  ;;  %v832_v26 = vsel %vm830_vm13, %v827_v24, %v2425_v63 }
 0x1c9   : > { %v837_v29 = vadd.f32 %v831_v14, %v800_v15  ;;  %v838_v30 = vadd.f32 %v832_v26, %v801_v20 }
 0x1cb   : > { %v871_v35 = vadd.f32 %v865_v31, %v837_v29  ;;  %v872_v37 = vadd.f32 %v866_v32, %v838_v30 }
 0x1cd   : > { %v880_v39 = vmul.f32 %v877_v33, %v871_v35  ;;  %v881_v41 = vmul.f32 %v877_v33, %v872_v37 }
 0x1cf   : > { %v886_v43 = vpop.permute.xlu0 %885 }
 0x1d0   : > { %v888_v44 = vadd.f32 %v886_v43, %v879_v42  ;;  %v889_v45 = vadd.f32 %v886_v43, %v880_v39  ;;  %v890_v46 = vadd.f32 %v886_v43, %v881_v41 }
 0x1d2   : > { %1973 = vtanh.f32 %v888_v44 }
 0x1d3   : > { %1975 = vtanh.f32 %v889_v45 }
 0x1d4   : > { %1977 = vtanh.f32 %v890_v46 }
 0x1d8   : > { %v1974_v3 = vpop.eup %1973 }
 0x1d9   : > { %v1976_v47 = vpop.eup %1975  ;;  %902 = vrot.lane.b32.xlu1 %v1974_v3, %s2884_s25 }
 0x1da   : > { %v1978_v10 = vpop.eup %1977  ;;  %904 = vrot.lane.b32.xlu2 %v1976_v47, %s2884_s25 }
 0x1db   : > { %906 = vrot.lane.b32.xlu0 %v1978_v10, %s2884_s25 }
 0x234   : > { %v905_v61 = vpop.permute.xlu2 %904 }
 0x24b   : > { %v903_v7 = vpop.permute.xlu1 %902 }
 0x24c   : > { %v908_v52 = vsel %vm847_vm3, %v903_v7, %v905_v61 }
 0x24d   : > { %v907_v53 = vpop.permute.xlu0 %906  ;;  %1871 = vmatpush.msk.msrb.mxu2 %vm527_vm0, %v908_v52 }
 0x24e   : > { %v909_v57 = vsel %vm847_vm3, %v905_v61, %v907_v53  ;;  %1872 = vmatmul.msk.f32.vlgmr.msrb.gmra.mxu2 %vm511_vm1, %v894_v48 }
 0x24f   : > { %1877 = vmatpush.msk.msrb.mxu3 %vm527_vm0, %v909_v57 }
 0x250   : > { %1878 = vmatmul.msk.f32.vlgmr.msrb.gmra.mxu3 %vm511_vm1, %v894_v48 }
 0x256   : > { %1873 = vmatmul.msk.f32.gmra.mxu2 %vm511_vm1, %v895_v8 }
 0x258   : > { %1879 = vmatmul.msk.f32.gmra.mxu3 %vm511_vm1, %v895_v8 }
 0x25e   : > { %1874 = vmatmul.msk.f32.gmra.mxu2 %vm511_vm1, %v896_v12 }
 0x260   : > { %1880 = vmatmul.msk.f32.gmra.mxu3 %vm511_vm1, %v896_v12 }
 0x266   : > { %1875 = vmatmul.msk.f32.gmra.mxu2 %vm511_vm1, %v897_v0 }
 0x268   : > { %1881 = vmatmul.msk.f32.gmra.mxu3 %vm511_vm1, %v897_v0 }
 0x26e   : > { %1876 = vmatmul.msk.f32.gmra.mxu2 %vm511_vm1, %v898_v16 }
 0x270   : > { %1882 = vmatmul.msk.f32.gmra.mxu3 %vm511_vm1, %v898_v16 }
 0x2d1   : > { %v2498_v18 = vpop.f32.mrf.mxu2 }
 0x2d2   : > { %v995_v9 = vmul.f32 %v2498_v18, %v2343_v4  ;;  %v993_v8 = vmul.f32 %v2498_v18, %v2437_v21 }
 0x2d3   : > { %v978_v15 = vpop.f32.mrf.mxu3 }
 0x2d4   : > { %v999_v20 = vrot.slane %v995_v9, 4  ;;  %v996_v24 = vmul.f32 %v978_v15, %v2322_v50  ;;  %v994_v12 = vmul.f32 %v978_v15, %v2413_v54 }
 0x2d6   : > { %v1000_v25 = vrot.slane %v996_v24, 4  ;;  %1001 = vrot.lane.b32.xlu1 %v999_v20, %s2882_s24 }
 0x2d8   : > { %1003 = vrot.lane.b32.xlu2 %v1000_v25, %s2882_s24 }
 0x2d9   : > { %v949_v14 = vpop.f32.mrf.mxu2 }
 0x2da   : > { %v1013_v26 = vmul.f32 %v949_v14, %v2362_v19  ;;  %v1029_v29 = vmul.f32 %v949_v14, %v2370_v22 }
 0x2db   : > { %v981_v30 = vpop.f32.mrf.mxu3 }
 0x2dc   : > { %v1033_v31 = vrot.slane %v1029_v29, 4  ;;  %v1014_v32 = vmul.f32 %v981_v30, %v2319_v49  ;;  %1017 = vrot.lane.b32.xlu0 %v1013_v26, %s2886_s0  ;;  %v1030_v4 = vmul.f32 %v981_v30, %v2326_v55 }
 0x2de   : > { %1019 = vrot.lane.b32.xlu1 %v1014_v32, %s2886_s0  ;;  %v1034_v33 = vrot.slane %v1030_v4, 4 }
 0x2e0   : > { %1035 = vrot.lane.b32.xlu2 %v1033_v31, %s2883_s26 }
 0x2e1   : > { %v952_v50 = vpop.f32.mrf.mxu2 }
 0x2e2   : > { %v1060_v19 = vmul.f32 %v952_v50, %v2324_v51 }
 0x2e3   : > { %v984_v35 = vpop.f32.mrf.mxu3 }
 0x2e4   : > { %1037 = vrot.lane.b32.xlu0 %v1034_v33, %s2883_s26  ;;  %v1061_v22 = vmul.f32 %v984_v35, %v2377_v28  ;;  %v1064_v49 = vrot.slane %v1060_v19, 4 }
 0x2e6   : > { %1049 = vrot.lane.b32.xlu1 %v952_v50, %s2887_s17  ;;  %v1065_v55 = vrot.slane %v1061_v22, 4 }
 0x2e8   : > { %1051 = vrot.lane.b32.xlu2 %v984_v35, %s2887_s17 }
 0x2e9   : > { %v955_v37 = vpop.f32.mrf.mxu2 }
 0x2ea   : > { %v1078_v38 = vmul.f32 %v955_v37, %v2333_v60  ;;  %v1094_v41 = vmul.f32 %v955_v37, %v2337_v1 }
 0x2eb   : > { %v987_v39 = vpop.f32.mrf.mxu3 }
 0x2ec   : > { %1066 = vrot.lane.b32.xlu0 %v1064_v49, %s2888_s14  ;;  %v1079_v51 = vmul.f32 %v987_v39, %v2390_v36  ;;  %v1095_v28 = vmul.f32 %v987_v39, %v2397_v40  ;;  %v1098_v42 = vrot.slane %v1094_v41, 4  ;;  %v1128_v36 = vld [vmem:[%s2837_s10] sm:$0xf] }
 0x2ee   : > { %1068 = vrot.lane.b32.xlu1 %v1065_v55, %s2888_s14  ;;  %v1099_v43 = vrot.slane %v1095_v28, 4 }
 0x2f0   : > { %1082 = vrot.lane.b32.xlu2 %v1078_v38, %s2889_s22 }
 0x2f1   : > { %v958_v44 = vpop.f32.mrf.mxu2 }
 0x2f2   : > { %v1112_v45 = vmul.f32 %v958_v44, %v2351_v11 }
 0x2f3   : > { %v990_v60 = vpop.f32.mrf.mxu3 }
 0x2f4   : > { %1084 = vrot.lane.b32.xlu0 %v1079_v51, %s2889_s22  ;;  %v1113_v1 = vmul.f32 %v990_v60, %v2356_v13 }
 0x2f6   : > { %1100 = vrot.lane.b32.xlu1 %v1098_v42, %s2890_s23 }
 0x2f8   : > { %1102 = vrot.lane.b32.xlu2 %v1099_v43, %s2890_s23 }
 0x2fc   : > { %1116 = vrot.lane.b32.xlu0 %v1112_v45, %s2891_s21 }
 0x2fe   : > { %1118 = vrot.lane.b32.xlu1 %v1113_v1, %s2891_s21 }
 0x300   : > { %1131 = vperm.xlu2 %1969, %v1128_v36  }
 0x332   : > { %v1004_v40 = vpop.permute.xlu2 %1003 }
 0x333   : > { %v1012_v20 = vadd.f32 %v1004_v40, %v994_v12 }
 0x33a   : > { %v1036_v46 = vpop.permute.xlu2 %1035 }
 0x342   : > { %v1052_v61 = vpop.permute.xlu2 %1051 }
 0x348   : > { %v1002_v3 = vpop.permute.xlu1 %1001 }
 0x349   : > { %v1005_v11 = vsel %vm640_vm5, %v2423_v62, %v1002_v3  ;;  %v1006_v53 = vsel %vm640_vm5, %v1002_v3, %v1004_v40 }
 0x34a   : > { %v1083_v13 = vpop.permute.xlu2 %1082  ;;  %v1010_v57 = vadd.f32 %v1005_v11, %v2431_v17  ;;  %v1011_v24 = vadd.f32 %v1006_v53, %v993_v8 }
 0x34e   : > { %v1018_v47 = vpop.permute.xlu0 %1017 }
 0x34f   : > { %v1021_v52 = vsel %vm674_vm9, %v2417_v58, %v1018_v47  ;;  %v1039_v58 = vsel %vm620_vm2, %v2427_v5, %v1036_v46 }
 0x350   : > { %v1020_v10 = vpop.permute.xlu1 %1019  ;;  %v1026_v16 = vadd.f32 %v1021_v52, %v1010_v57 }
 0x351   : > { %v1022_v9 = vsel %vm674_vm9, %v1018_v47, %v1020_v10  ;;  %v1028_v26 = vadd.f32 %v1020_v10, %v1012_v20 }
 0x352   : > { %v1027_v14 = vadd.f32 %v1022_v9, %v1011_v24  ;;  %v1044_v17 = vadd.f32 %v1039_v58, %v1026_v16  ;;  %v1103_v18 = vpop.permute.xlu2 %1102 }
 0x356   : > { %v1038_v7 = vpop.permute.xlu0 %1037 }
 0x357   : > { %v1040_v25 = vsel %vm620_vm2, %v1036_v46, %v1038_v7  ;;  %v1046_v30 = vadd.f32 %v1038_v7, %v1028_v26  ;;  %v1137_v7 = vld [vmem:[%s2832_s5] sm:$0xff] }
 0x358   : > { %v1050_v48 = vpop.permute.xlu1 %1049  ;;  %v1045_v29 = vadd.f32 %v1040_v25, %v1027_v14 }
 0x359   : > { %v1053_v21 = vsel %vm604_vm10, %v1050_v48, %v1052_v61  ;;  %v1057_v54 = vadd.f32 %v1050_v48, %v1044_v17  ;;  %v1059_v50 = vadd.f32 %v1052_v61, %v1046_v30 }
 0x35a   : > { %v1058_v33 = vadd.f32 %v1053_v21, %v1045_v29  ;;  %v1132_v42 = vpop.permute.xlu2 %1131 }
 0x35e   : > { %v1067_v0 = vpop.permute.xlu0 %1066 }
 0x35f   : > { %v1075_v31 = vadd.f32 %v1067_v0, %v1057_v54 }
 0x360   : > { %v1069_v62 = vpop.permute.xlu1 %1068 }
 0x361   : > { %v1070_v32 = vsel %vm759_vm11, %v1067_v0, %v1069_v62  ;;  %v1071_v4 = vsel %vm759_vm11, %v1069_v62, %v2419_v59  ;;  %v1091_v37 = vadd.f32 %v1083_v13, %v1075_v31  ;;  %v1105_v59 = vsel %vm830_vm13, %v1103_v18, %v2425_v63 }
 0x362   : > { %v1076_v22 = vadd.f32 %v1070_v32, %v1058_v33  ;;  %v1077_v49 = vadd.f32 %v1071_v4, %v1059_v50 }
 0x366   : > { %v1085_v15 = vpop.permute.xlu0 %1084 }
 0x367   : > { %v1086_v5 = vsel %vm793_vm12, %v1083_v13, %v1085_v15  ;;  %v1087_v19 = vsel %vm793_vm12, %v1085_v15, %v2415_v56 }
 0x368   : > { %v1101_v35 = vpop.permute.xlu1 %1100  ;;  %v1092_v55 = vadd.f32 %v1086_v5, %v1076_v22  ;;  %v1093_v38 = vadd.f32 %v1087_v19, %v1077_v49 }
 0x369   : > { %v1104_v39 = vsel %vm830_vm13, %v1101_v35, %v1103_v18  ;;  %v1109_v41 = vadd.f32 %v1101_v35, %v1091_v37 }
 0x36a   : > { %v1110_v43 = vadd.f32 %v1104_v39, %v1092_v55  ;;  %v1111_v60 = vadd.f32 %v1105_v59, %v1093_v38 }
 0x36e   : > { %v1117_v51 = vpop.permute.xlu0 %1116 }
 0x36f   : > { %v1125_v28 = vadd.f32 %v1117_v51, %v1109_v41 }
 0x370   : > { %v1119_v44 = vpop.permute.xlu1 %1118 }
 0x371   : > { %v1134_v45 = vadd.f32 %v1132_v42, %v1125_v28  ;;  %v1120_v56 = vsel %vm864_vm14, %v1117_v51, %v1119_v44  ;;  %v1121_v1 = vsel %vm864_vm14, %v1119_v44, %v2456_v23 }
 0x372   : > { %v1126_v36 = vadd.f32 %v1120_v56, %v1110_v43  ;;  %v1127_v40 = vadd.f32 %v1121_v1, %v1111_v60 }
 0x373   : > { %1142 = vrot.lane.b32.xlu0 %v1134_v45, %s2884_s25 }
 0x374   : > { %v1136_v46 = vadd.f32 %v1132_v42, %v1127_v40  ;;  %v1135_v3 = vadd.f32 %v1132_v42, %v1126_v36 }
 0x376   : > { %1146 = vrot.lane.b32.xlu2 %v1136_v46, %s2884_s25  ;;  %1144 = vrot.lane.b32.xlu1 %v1135_v3, %s2884_s25  ;;  %v1679_v63 = vrot.slane %v1135_v3, 4 }
 0x378   : > { %v2564_v47 = vsel %vm527_vm0, %v1134_v45, %v1679_v63 }
 0x37b   : > { %1219 = vrot.lane.b32.xlu0 %v2226_v2, %s2883_s26 }
 0x37e   : > { %1221 = vrot.lane.b32.xlu1 %v2236_v6, %s2883_s26  ;;  %1250 = vrot.lane.b32.xlu2 %v2226_v2, %s2892_s1 }
 0x383   : > { %1252 = vrot.lane.b32.xlu0 %v2236_v6, %s2892_s1 }
 0x386   : > { %1281 = vrot.lane.b32.xlu1 %v2226_v2, %s2882_s24  ;;  %1283 = vrot.lane.b32.xlu2 %v2236_v6, %s2882_s24 }
 0x38b   : > { %1327 = vrot.lane.b32.xlu0 %v2226_v2, %s2880_s16 }
 0x38e   : > { %1329 = vrot.lane.b32.xlu1 %v2236_v6, %s2880_s16  ;;  %1358 = vrot.lane.b32.xlu2 %v2226_v2, %s2893_s3 }
 0x393   : > { %1360 = vrot.lane.b32.xlu0 %v2236_v6, %s2893_s3 }
 0x396   : > { %1389 = vrot.lane.b32.xlu1 %v2226_v2, %s2894_s4  ;;  %1391 = vrot.lane.b32.xlu2 %v2236_v6, %s2894_s4  ;;  %s1899_s4 = sshll.u32 %s2193_s11, 3 }
 0x39b   : > { %1422 = vrot.lane.b32.xlu0 %v2283_v34, %s2884_s25 }
 0x39e   : > { %1424 = vrot.lane.b32.xlu1 %v2274_v27, %s2884_s25  ;;  %1208 = vrot.lane.b32.xlu2 %v2226_v2, %s2887_s17  ;;  %v1138_v27 = vld [vmem:[%s2832_s5 + $0x8] sm:$0x1] }
 0x3a3   : > { %1210 = vrot.lane.b32.xlu0 %v2236_v6, %s2887_s17 }
 0x3d0   : > { %v2598_v10 = vpop.permute.xlu2 %1146 }
 0x3d8   : > { %v1251_v52 = vpop.permute.xlu2 %1250 }
 0x3d9   : > { %v1258_v53 = vmul.f32 0.0, %v1251_v52 }
 0x3db   : > { %v1264_v8 = vrot.slane %v1258_v53, 2 }
 0x3e0   : > { %v1284_v26 = vpop.permute.xlu2 %1283 }
 0x3e5   : > { %v1143_v23 = vpop.permute.xlu0 %1142 }
 0x3e8   : > { %v1145_v61 = vpop.permute.xlu1 %1144  ;;  %v1359_v17 = vpop.permute.xlu2 %1358 }
 0x3e9   : > { %v1148_v48 = vsel %vm847_vm3, %v1143_v23, %v1145_v61  ;;  %v1149_v34 = vsel %vm847_vm3, %v1145_v61, %v2598_v10 }
 0x3ea   : > { %1883 = vmatpush.msk.msrb.mxu0 %vm527_vm0, %v1148_v48  ;;  %1886 = vmatpush.msk.msrb.mxu1 %vm527_vm0, %v1149_v34 }
 0x3eb   : > { %1884 = vmatmul.msk.f32.vlgmr.msrb.gmra.mxu0 %vm511_vm1, %v1137_v7  ;;  %1887 = vmatmul.msk.f32.vlgmr.msrb.gmra.mxu1 %vm511_vm1, %v1137_v7 }
 0x3ed   : > { %v1220_v2 = vpop.permute.xlu0 %1219 }
 0x3ee   : > { %v1227_v6 = vmul.f32 0.0, %v1220_v2 }
 0x3f0   : > { %v1233_v11 = vrot.slane %v1227_v6, 1  ;;  %v1222_v13 = vpop.permute.xlu1 %1221  ;;  %v1392_v29 = vpop.permute.xlu2 %1391 }
 0x3f1   : > { %v1223_v5 = vsel %vm620_vm2, %v1220_v2, %v1222_v13  ;;  %v1399_v7 = vmul.f32 0.0, %v1392_v29 }
 0x3f2   : > { %1236 = vrot.lane.b32.xlu1 %v1233_v11, %s2882_s24 }
 0x3f3   : > { %1888 = vmatmul.msk.f32.gmra.mxu1 %vm511_vm1, %v1138_v27  ;;  %1885 = vmatmul.msk.f32.gmra.mxu0 %vm511_vm1, %v1138_v27  ;;  %v1405_v27 = vrot.slane %v1399_v7, 7  ;;  %vm1519_vm1 = vcmask 875520  }
 0x3f5   : > { %v1253_v57 = vpop.permute.xlu0 %1252 }
 0x3f6   : > { %v1254_v41 = vsel %vm657_vm4, %v1251_v52, %v1253_v57 }
 0x3f8   : > { %v1282_v12 = vpop.permute.xlu1 %1281  ;;  %v2622_v21 = vpop.permute.xlu2 %1208 }
 0x3f9   : > { %v1289_v0 = vmul.f32 0.0, %v1282_v12  ;;  %v1285_v56 = vsel %vm640_vm5, %v1282_v12, %v1284_v26 }
 0x3fa   : > { %1267 = vrot.lane.b32.xlu1 %v1264_v8, %s2886_s0 }
 0x3fb   : > { %v1295_v9 = vrot.slane %v1289_v0, 3 }
 0x3fd   : > { %v1328_v16 = vpop.permute.xlu0 %1327 }
 0x400   : > { %v1330_v20 = vpop.permute.xlu1 %1329 }
 0x401   : > { %v1337_v24 = vmul.f32 0.0, %v1330_v20  ;;  %v1331_v32 = vsel %vm739_vm6, %v1328_v16, %v1330_v20 }
 0x402   : > { %1298 = vrot.lane.b32.xlu1 %v1295_v9, %s2883_s26 }
 0x403   : > { %v1343_v62 = vrot.slane %v1337_v24, 5 }
 0x405   : > { %1348 = vrot.lane.b32.xlu2 %v1343_v62, %s2888_s14  ;;  %v1361_v25 = vpop.permute.xlu0 %1360 }
 0x406   : > { %v1368_v58 = vmul.f32 0.0, %v1361_v25  ;;  %v1362_v38 = vsel %vm776_vm7, %v1359_v17, %v1361_v25 }
 0x408   : > { %v1374_v14 = vrot.slane %v1368_v58, 6  ;;  %v1390_v43 = vpop.permute.xlu1 %1389 }
 0x409   : > { %v1393_v60 = vsel %vm810_vm8, %v1390_v43, %v1392_v29 }
 0x40d   : > { %1379 = vrot.lane.b32.xlu2 %v1374_v14, %s2889_s22  ;;  %v2620_v30 = vpop.permute.xlu0 %1422 }
 0x410   : > { %v1425_v63 = vpop.permute.xlu1 %1424 }
 0x411   : > { %v1426_v34 = vsel %vm847_vm3, %v2620_v30, %v1425_v63  ;;  %v1432_v52 = vmul.f32 0.0, %v1425_v63 }
 0x415   : > { %v2629_v50 = vpop.permute.xlu0 %1210 }
 0x416   : > { %v1212_v35 = vsel %vm604_vm10, %v2622_v21, %v2629_v50 }
 0x45f   : > { %v1349_v12 = vpop.permute.xlu2 %1348 }
 0x464   : > { %v1237_v0 = vpop.permute.xlu1 %1236 }
 0x468   : > { %v1177_v54 = vpop.f32.mrf.mxu0  ;;  %v2624_v18 = vpop.f32.mrf.mxu1 }
 0x469   : > { %v1314_v15 = vrot.slane %v1177_v54, 4  ;;  %v1229_v31 = vmul.f32 %v1222_v13, %v2624_v18  ;;  %v1315_v4 = vrot.slane %v2624_v18, 4  ;;  %v1336_v19 = vmul.f32 %v1331_v32, %v2624_v18 }
 0x46a   : > { %v1228_v22 = vmul.f32 %v1223_v5, %v1177_v54  ;;  %v2639_v49 = vmul.f32 %v1212_v35, %v1177_v54  ;;  %v1260_v37 = vmul.f32 %v1253_v57, %v2624_v18  ;;  %v1367_v59 = vmul.f32 %v1362_v38, %v2624_v18 }
 0x46b   : > { %1316 = vrot.lane.b32.xlu1 %v1314_v15, %s2887_s17  ;;  %v1235_v33 = vrot.slane %v1229_v31, 1  ;;  %1318 = vrot.lane.b32.xlu2 %v1315_v4, %s2887_s17  ;;  %v1342_v55 = vrot.slane %v1336_v19, 5  ;;  %v1259_v28 = vmul.f32 %v1254_v41, %v1177_v54  ;;  %v1291_v42 = vmul.f32 %v1284_v26, %v2624_v18 }
 0x46c   : > { %v1234_v39 = vrot.slane %v1228_v22, 1  ;;  %v1266_v51 = vrot.slane %v1260_v37, 2  ;;  %v1373_v44 = vrot.slane %v1367_v59, 6  ;;  %v1398_v36 = vmul.f32 %v1393_v60, %v2624_v18  ;;  %v1268_v9 = vpop.permute.xlu1 %1267 }
 0x46d   : > { %1240 = vrot.lane.b32.xlu0 %v1235_v33, %s2882_s24  ;;  %v1265_v45 = vrot.slane %v1259_v28, 2  ;;  %v1297_v1 = vrot.slane %v1291_v42, 3  ;;  %v1290_v40 = vmul.f32 %v1285_v56, %v1177_v54  ;;  %v1335_v46 = vmul.f32 %v1328_v16, %v1177_v54  ;;  %v1380_v16 = vpop.permute.xlu2 %1379 }
 0x46e   : > { %v1404_v3 = vrot.slane %v1398_v36, 7  ;;  %v1366_v2 = vmul.f32 %v1359_v17, %v1177_v54  ;;  %v1397_v13 = vmul.f32 %v1390_v43, %v1177_v54  ;;  %v1218_v29 = vmul.f32 %v2629_v50, %v2624_v18 }
 0x46f   : > { %v1296_v23 = vrot.slane %v1290_v40, 3  ;;  %v1341_v61 = vrot.slane %v1335_v46, 5  ;;  %v1216_v18 = vmul.f32 0.0, %v2622_v21 }
 0x470   : > { %v1203_v48 = vpop.f32.mrf.mxu1  ;;  %v1372_v11 = vrot.slane %v1366_v2, 6  ;;  %v1403_v53 = vrot.slane %v1397_v13, 7  ;;  %v1180_v57 = vpop.f32.mrf.mxu0 }
 0x471   : > { %v1431_v6 = vmul.f32 %v1426_v34, %v1203_v48  ;;  %v1430_v8 = vmul.f32 %v2620_v30, %v1180_v57 }
 0x473   : > { %1346 = vrot.lane.b32.xlu1 %v1342_v55, %s2888_s14  ;;  %1238 = vrot.lane.b32.xlu2 %v1234_v39, %s2882_s24  ;;  %s2095_s24 = smov 107  }
 0x474   : > { %v1299_v24 = vpop.permute.xlu1 %1298 }
 0x475   : > { %1271 = vrot.lane.b32.xlu0 %v1266_v51, %s2886_s0 }
 0x47b   : > { %1377 = vrot.lane.b32.xlu1 %v1373_v44, %s2889_s22  ;;  %1269 = vrot.lane.b32.xlu2 %v1265_v45, %s2886_s0  ;;  %s2096_s0 = smov 103  }
 0x47d   : > { %1302 = vrot.lane.b32.xlu0 %v1297_v1, %s2883_s26 }
 0x483   : > { %1408 = vrot.lane.b32.xlu1 %v1404_v3, %s2890_s23  ;;  %1300 = vrot.lane.b32.xlu2 %v1296_v23, %s2883_s26 }
 0x485   : > { %1344 = vrot.lane.b32.xlu0 %v1341_v61, %s2888_s14 }
 0x48b   : > { %1438 = vrot.lane.b32.xlu1 %v1431_v6, %s2891_s21  ;;  %1410 = vrot.lane.b32.xlu2 %v1405_v27, %s2890_s23 }
 0x48d   : > { %1375 = vrot.lane.b32.xlu0 %v1372_v11, %s2889_s22 }
 0x493   : > { %1440 = vrot.lane.b32.xlu2 %v1432_v52, %s2891_s21 }
 0x495   : > { %1406 = vrot.lane.b32.xlu0 %v1403_v53, %s2890_s23 }
 0x49d   : > { %1436 = vrot.lane.b32.xlu0 %v1430_v8, %s2891_s21 }
 0x4c5   : > { %v1319_v20 = vpop.permute.xlu2 %1318 }
 0x4cd   : > { %v1239_v62 = vpop.permute.xlu2 %1238 }
 0x4ce   : > { %v1242_v50 = vsel %vm640_vm5, %v1237_v0, %v1239_v62 }
 0x4cf   : > { %v1247_v45 = vadd.f32 %v1242_v50, %v1216_v18 }
 0x4d5   : > { %v1270_v14 = vpop.permute.xlu2 %1269 }
 0x4d6   : > { %v1273_v43 = vsel %vm674_vm9, %v1268_v9, %v1270_v14 }
 0x4d7   : > { %v1278_v36 = vadd.f32 %v1273_v43, %v1247_v45 }
 0x4dd   : > { %v1317_v25 = vpop.permute.xlu1 %1316  ;;  %v1301_v54 = vpop.permute.xlu2 %1300 }
 0x4de   : > { %v1304_v21 = vsel %vm620_vm2, %v1299_v24, %v1301_v54  ;;  %v1320_v61 = vsel %vm604_vm10, %v1317_v25, %v1319_v20 }
 0x4df   : > { %v1241_v58 = vpop.permute.xlu0 %1240  ;;  %v1309_v3 = vadd.f32 %v1304_v21, %v1278_v36 }
 0x4e0   : > { %v1249_v15 = vadd.f32 %v1241_v58, %v1218_v29  ;;  %v1243_v28 = vsel %vm640_vm5, %v1239_v62, %v1241_v58  ;;  %vm1545_vm5 = vcmask 842752  }
 0x4e1   : > { %v1248_v1 = vadd.f32 %v1243_v28, %v2639_v49  ;;  %v1324_v7 = vadd.f32 %v1317_v25, %v1309_v3 }
 0x4e5   : > { %v1347_v26 = vpop.permute.xlu1 %1346  ;;  %v1411_v35 = vpop.permute.xlu2 %1410 }
 0x4e6   : > { %v1351_v5 = vsel %vm759_vm11, %v1347_v26, %v1349_v12 }
 0x4e7   : > { %v1272_v17 = vpop.permute.xlu0 %1271 }
 0x4e8   : > { %v1280_v31 = vadd.f32 %v1272_v17, %v1249_v15  ;;  %v1274_v56 = vsel %vm674_vm9, %v1270_v14, %v1272_v17 }
 0x4e9   : > { %v1279_v46 = vadd.f32 %v1274_v56, %v1248_v1 }
 0x4ed   : > { %v1378_v30 = vpop.permute.xlu1 %1377  ;;  %v1441_v51 = vpop.permute.xlu2 %1440 }
 0x4ee   : > { %v1382_v55 = vsel %vm793_vm12, %v1378_v30, %v1380_v16  ;;  %v2093_v16 = vmov 0.0  }
 0x4ef   : > { %v1303_v32 = vpop.permute.xlu0 %1302 }
 0x4f0   : > { %v1311_v4 = vadd.f32 %v1303_v32, %v1280_v31  ;;  %v1305_v40 = vsel %vm620_vm2, %v1301_v54, %v1303_v32 }
 0x4f1   : > { %v1310_v63 = vadd.f32 %v1305_v40, %v1279_v46 }
 0x4f2   : > { %v1326_v33 = vadd.f32 %v1319_v20, %v1311_v4 }
 0x4f3   : > { %v1325_v34 = vadd.f32 %v1320_v61, %v1310_v63 }
 0x4f4   : > { %v1357_v19 = vadd.f32 %v1351_v5, %v1326_v33 }
 0x4f5   : > { %v1409_v22 = vpop.permute.xlu1 %1408 }
 0x4f6   : > { %v1388_v38 = vadd.f32 %v1382_v55, %v1357_v19  ;;  %v1413_v39 = vsel %vm830_vm13, %v1409_v22, %v1411_v35 }
 0x4f7   : > { %v1345_v37 = vpop.permute.xlu0 %1344 }
 0x4f8   : > { %v1419_v41 = vadd.f32 %v1413_v39, %v1388_v38  ;;  %v1350_v48 = vsel %vm759_vm11, %v1345_v37, %v1347_v26  ;;  %v1355_v2 = vadd.f32 %v1345_v37, %v1324_v7  ;;  %v1980_v7 = vld [vmem:[%s2829_s2 + $0x10] sm:$0x3] }
 0x4f9   : > { %v1356_v6 = vadd.f32 %v1350_v48, %v1325_v34  ;;  %v1554_v48 = vrot.slane %v1980_v7, 1 }
 0x4fd   : > { %v1439_v59 = vpop.permute.xlu1 %1438 }
 0x4fe   : > { %v1443_v42 = vsel %vm864_vm14, %v1439_v59, %v1441_v51 }
 0x4ff   : > { %v1449_v44 = vadd.f32 %v1443_v42, %v1419_v41  ;;  %v1376_v60 = vpop.permute.xlu0 %1375 }
 0x500   : > { %v1381_v49 = vsel %vm793_vm12, %v1376_v60, %v1378_v30  ;;  %v1386_v27 = vadd.f32 %v1376_v60, %v1355_v2 }
 0x501   : > { %1457 = vrot.lane.b32.xlu2 %v1449_v44, %s2884_s25  ;;  %v1387_v13 = vadd.f32 %v1381_v49, %v1356_v6 }
 0x507   : > { %v1407_v23 = vpop.permute.xlu0 %1406 }
 0x508   : > { %v1412_v11 = vsel %vm830_vm13, %v1407_v23, %v1409_v22  ;;  %v1417_v52 = vadd.f32 %v1407_v23, %v1386_v27  ;;  %v1979_v23 = vld [vmem:[%s2829_s2 + $0x18] sm:$0x3] }
 0x509   : > { %v1418_v53 = vadd.f32 %v1412_v11, %v1387_v13  ;;  %1466 = vrot.lane.b32.xlu2 %v2093_v16, %s2888_s14  ;;  %v1555_v61 = vrot.slane %v1979_v23, 1 }
 0x50f   : > { %v1437_v57 = vpop.permute.xlu0 %1436 }
 0x510   : > { %v1442_v8 = vsel %vm864_vm14, %v1437_v57, %v1439_v59  ;;  %v1447_v12 = vadd.f32 %v1437_v57, %v1417_v52 }
 0x511   : > { %v1448_v0 = vadd.f32 %v1442_v8, %v1418_v53 }
 0x512   : > { %1453 = vrot.lane.b32.xlu0 %v1447_v12, %s2884_s25 }
 0x513   : > { %1455 = vrot.lane.b32.xlu1 %v1448_v0, %s2884_s25 }
 0x55b   : > { %v1458_v20 = vpop.permute.xlu2 %1457 }
 0x563   : > { %v1467_v58 = vpop.permute.xlu2 %1466 }
 0x584   : > { %v1454_v9 = vpop.permute.xlu0 %1453 }
 0x585   : > { %v1456_v24 = vpop.permute.xlu1 %1455 }
 0x586   : > { %v1460_v62 = vsel %vm847_vm3, %v1456_v24, %v1458_v20  ;;  %v1459_v25 = vsel %vm847_vm3, %v1454_v9, %v1456_v24 }
 0x587   : > { %1464 = vrot.lane.b32.xlu1 %v1460_v62, %s2888_s14  ;;  %1462 = vrot.lane.b32.xlu0 %v1459_v25, %s2888_s14 }
 0x5f9   : > { %v1465_v14 = vpop.permute.xlu1 %1464  ;;  %v1463_v26 = vpop.permute.xlu0 %1462 }
 0x5fa   : > { %v1469_v17 = vsel %vm759_vm11, %v1465_v14, %v1467_v58  ;;  %v1468_v29 = vsel %vm759_vm11, %v1463_v26, %v1465_v14  ;;  %v1473_v54 = vadd.f32 %v1463_v26, %v1447_v12 }
 0x5fb   : > { %v1475_v15 = vadd.f32 %v1469_v17, %v1449_v44  ;;  %v1474_v30 = vadd.f32 %v1468_v29, %v1448_v0 }
 0x5fc   : > { %1479 = vrot.lane.b32.xlu0 %v1473_v54, %s2884_s25 }
 0x5fd   : > { %1483 = vrot.lane.b32.xlu2 %v1475_v15, %s2884_s25  ;;  %1481 = vrot.lane.b32.xlu1 %v1474_v30, %s2884_s25 }
 0x605   : > { %1491 = vrot.lane.b32.xlu2 %v2093_v16, %s2094_s7 }
 0x657   : > { %v1484_v32 = vpop.permute.xlu2 %1483 }
 0x65f   : > { %v1492_v5 = vpop.permute.xlu2 %1491 }
 0x66e   : > { %v1480_v31 = vpop.permute.xlu0 %1479 }
 0x66f   : > { %v1482_v4 = vpop.permute.xlu1 %1481 }
 0x670   : > { %v1486_v33 = vsel %vm847_vm3, %v1482_v4, %v1484_v32  ;;  %v1485_v35 = vsel %vm847_vm3, %v1480_v31, %v1482_v4 }
 0x671   : > { %1489 = vrot.lane.b32.xlu1 %v1486_v33, %s2094_s7  ;;  %1487 = vrot.lane.b32.xlu0 %v1485_v35, %s2094_s7  ;;  %s2002_s7 = scalar_lea.hbm %s2839_s12, 16 }
 0x6e3   : > { %v1490_v19 = vpop.permute.xlu1 %1489  ;;  %v1488_v22 = vpop.permute.xlu0 %1487 }
 0x6e4   : > { %v1495_v37 = vsel %vm1493_vm15, %v1490_v19, %v1492_v5  ;;  %v1494_v55 = vsel %vm1493_vm15, %v1488_v22, %v1490_v19  ;;  %v1499_v38 = vadd.f32 %v1488_v22, %v1473_v54 }
 0x6e5   : > { %v1501_v39 = vadd.f32 %v1495_v37, %v1475_v15  ;;  %v1500_v18 = vadd.f32 %v1494_v55, %v1474_v30 }
 0x6e6   : > { %1505 = vrot.lane.b32.xlu0 %v1499_v38, %s2884_s25 }
 0x6e7   : > { %1509 = vrot.lane.b32.xlu2 %v1501_v39, %s2884_s25  ;;  %1507 = vrot.lane.b32.xlu1 %v1500_v18, %s2884_s25 }
 0x6ef   : > { %1517 = vrot.lane.b32.xlu2 %v2093_v16, %s2095_s24 }
 0x741   : > { %v1510_v41 = vpop.permute.xlu2 %1509 }
 0x749   : > { %v1518_v42 = vpop.permute.xlu2 %1517 }
 0x758   : > { %v1506_v50 = vpop.permute.xlu0 %1505 }
 0x759   : > { %v1508_v51 = vpop.permute.xlu1 %1507 }
 0x75a   : > { %v1512_v59 = vsel %vm847_vm3, %v1508_v51, %v1510_v41  ;;  %v1511_v28 = vsel %vm847_vm3, %v1506_v50, %v1508_v51 }
 0x75b   : > { %1515 = vrot.lane.b32.xlu1 %v1512_v59, %s2095_s24  ;;  %1513 = vrot.lane.b32.xlu0 %v1511_v28, %s2095_s24 }
 0x7cd   : > { %v1516_v43 = vpop.permute.xlu1 %1515  ;;  %v1514_v44 = vpop.permute.xlu0 %1513 }
 0x7ce   : > { %v1521_v60 = vsel %vm1519_vm1, %v1516_v43, %v1518_v42  ;;  %v1520_v45 = vsel %vm1519_vm1, %v1514_v44, %v1516_v43  ;;  %v1525_v56 = vadd.f32 %v1514_v44, %v1499_v38 }
 0x7cf   : > { %v1527_v1 = vadd.f32 %v1521_v60, %v1501_v39  ;;  %v1526_v21 = vadd.f32 %v1520_v45, %v1500_v18 }
 0x7d0   : > { %1531 = vrot.lane.b32.xlu0 %v1525_v56, %s2884_s25 }
 0x7d1   : > { %1535 = vrot.lane.b32.xlu2 %v1527_v1, %s2884_s25  ;;  %1533 = vrot.lane.b32.xlu1 %v1526_v21, %s2884_s25 }
 0x7d9   : > { %1543 = vrot.lane.b32.xlu2 %v2093_v16, %s2096_s0 }
 0x82b   : > { %v1536_v40 = vpop.permute.xlu2 %1535 }
 0x833   : > { %v1544_v49 = vpop.permute.xlu2 %1543 }
 0x842   : > { %v1532_v36 = vpop.permute.xlu0 %1531 }
 0x843   : > { %v1534_v46 = vpop.permute.xlu1 %1533 }
 0x844   : > { %v1538_v3 = vsel %vm847_vm3, %v1534_v46, %v1536_v40  ;;  %v1537_v63 = vsel %vm847_vm3, %v1532_v36, %v1534_v46  ;;  %v1669_v40 = vld [vmem:[#allocation2] sm:$0x1] }
 0x845   : > { %1541 = vrot.lane.b32.xlu1 %v1538_v3, %s2096_s0  ;;  %1539 = vrot.lane.b32.xlu0 %v1537_v63, %s2096_s0  ;;  %s1725_s0 = scalar_lea.hbm %s2839_s12, %s1899_s4 }
 0x846   : > { %s1729_s22 = sshll.u32 %s1725_s0, 4  ;;  %s1730_s22 = int_to_ptr.hbm [resolvable:$true] %s1729_s22 }
 0x847   : > { %s1996_s21 = sshra.s32 %s1730_s22, 4  ;;  %s1997_s21 = int_to_ptr.hbm [resolvable:$true] %s1996_s21 }
 0x848   : > { %p2003_p0 = scmp.lt.s32.totalorder %s1997_s21, %s2839_s12 }
 0x84d   : > { %1558 = vrot.lane.b32.xlu1 %v1555_v61, %s2887_s17  ;;  %1556 = vrot.lane.b32.xlu0 %v1554_v48, %s2887_s17  ;;  %s2098_s17 = smov 119  }
 0x8b7   : > { %v1542_v34 = vpop.permute.xlu1 %1541  ;;  %v1540_v2 = vpop.permute.xlu0 %1539 }
 0x8b8   : > { %v1547_v6 = vsel %vm1545_vm5, %v1542_v34, %v1544_v49  ;;  %v1546_v27 = vsel %vm1545_vm5, %v1540_v2, %v1542_v34  ;;  %v1551_v13 = vadd.f32 %v1540_v2, %v1525_v56  ;;  %v1684_v2 = vrot.slane %v2598_v10, 4 }
 0x8b9   : > { %v1553_v11 = vadd.f32 %v1547_v6, %v1527_v1  ;;  %v1552_v52 = vadd.f32 %v1546_v27, %v1526_v21 }
 0x8bf   : > { %v1559_v53 = vpop.permute.xlu1 %1558  ;;  %v1557_v57 = vpop.permute.xlu0 %1556 }
 0x8c0   : > { %v1566_v8 = vmul.f32 %v1559_v53, %v1553_v11  ;;  %v1560_v12 = vsel %vm604_vm10, %v1557_v57, %v1559_v53  ;;  %v1564_v0 = vmul.f32 %v1557_v57, %v1551_v13 }
 0x8c1   : > { %v1565_v9 = vmul.f32 %v1560_v12, %v1552_v52 }
 0x8c2   : > { %1574 = vrot.lane.b32.xlu1 %v1566_v8, %s2884_s25  ;;  %1570 = vrot.lane.b32.xlu2 %v1564_v0, %s2884_s25 }
 0x8c3   : > { %1572 = vrot.lane.b32.xlu0 %v1565_v9, %s2884_s25 }
 0x8ca   : > { %1578 = vrot.lane.b32.xlu2 %v2093_v16, %s2883_s26 }
 0x91c   : > { %v1571_v24 = vpop.permute.xlu2 %1570 }
 0x924   : > { %v1579_v14 = vpop.permute.xlu2 %1578 }
 0x934   : > { %v1575_v20 = vpop.permute.xlu1 %1574 }
 0x935   : > { %v1573_v62 = vpop.permute.xlu0 %1572 }
 0x936   : > { %v1577_v25 = vsel %vm847_vm3, %v1573_v62, %v1575_v20  ;;  %v1576_v58 = vsel %vm847_vm3, %v1571_v24, %v1573_v62 }
 0x937   : > { %1582 = vrot.lane.b32.xlu1 %v1577_v25, %s2883_s26  ;;  %1580 = vrot.lane.b32.xlu0 %v1576_v58, %s2883_s26  ;;  %s2097_s26 = smov 115  }
 0x9a9   : > { %v1583_v26 = vpop.permute.xlu1 %1582  ;;  %v1581_v17 = vpop.permute.xlu0 %1580 }
 0x9aa   : > { %v1591_v29 = vadd.f32 %v1583_v26, %v1566_v8  ;;  %v1584_v54 = vsel %vm620_vm2, %v1579_v14, %v1581_v17  ;;  %v1585_v15 = vsel %vm620_vm2, %v1581_v17, %v1583_v26  ;;  %vm1634_vm2 = vcmask 941056  }
 0x9ab   : > { %v1589_v30 = vadd.f32 %v1584_v54, %v1564_v0  ;;  %v1590_v31 = vadd.f32 %v1585_v15, %v1565_v9 }
 0x9ac   : > { %1599 = vrot.lane.b32.xlu1 %v1591_v29, %s2884_s25 }
 0x9ad   : > { %1597 = vrot.lane.b32.xlu0 %v1590_v31, %s2884_s25  ;;  %1595 = vrot.lane.b32.xlu2 %v1589_v30, %s2884_s25 }
 0x9b5   : > { %1603 = vrot.lane.b32.xlu2 %v2093_v16, %s2892_s1 }
 0xa07   : > { %v1596_v4 = vpop.permute.xlu2 %1595 }
 0xa0f   : > { %v1604_v19 = vpop.permute.xlu2 %1603 }
 0xa1e   : > { %v1600_v32 = vpop.permute.xlu1 %1599 }
 0xa1f   : > { %v1598_v33 = vpop.permute.xlu0 %1597 }
 0xa20   : > { %v1602_v35 = vsel %vm847_vm3, %v1598_v33, %v1600_v32  ;;  %v1601_v5 = vsel %vm847_vm3, %v1596_v4, %v1598_v33 }
 0xa21   : > { %1607 = vrot.lane.b32.xlu1 %v1602_v35, %s2892_s1  ;;  %1605 = vrot.lane.b32.xlu0 %v1601_v5, %s2892_s1  ;;  %s2761_s1 = sand.u32 1, %s2068_s28  }
 0xa22   : > { %s2867_s16 = sshll.u32 %s2761_s1, 3  ;;  %s1709_s23 = scalar_lea.sflag [#allocation4], %s2761_s1 }
 0xa23   : > { %s454_s3 = scalar_lea.vmem [#allocation3], %s2867_s16 }
 0xa24   : > { %s1727_s14 = sshll.u32 %s454_s3, 4  ;;  %s1728_s14 = int_to_ptr.vmem [resolvable:$true] %s1727_s14 }
 0xa93   : > { %v1608_v22 = vpop.permute.xlu1 %1607  ;;  %v1606_v37 = vpop.permute.xlu0 %1605 }
 0xa94   : > { %v1616_v55 = vadd.f32 %v1608_v22, %v1591_v29  ;;  %v1610_v38 = vsel %vm657_vm4, %v1606_v37, %v1608_v22  ;;  %v1609_v39 = vsel %vm657_vm4, %v1604_v19, %v1606_v37  ;;  %vm1660_vm4 = vcmask 973824  }
 0xa95   : > { %v1615_v18 = vadd.f32 %v1610_v38, %v1590_v31  ;;  %v1614_v50 = vadd.f32 %v1609_v39, %v1589_v30 }
 0xa96   : > { %1624 = vrot.lane.b32.xlu1 %v1616_v55, %s2884_s25 }
 0xa97   : > { %1622 = vrot.lane.b32.xlu0 %v1615_v18, %s2884_s25  ;;  %1620 = vrot.lane.b32.xlu2 %v1614_v50, %s2884_s25 }
 0xa9f   : > { %1628 = vrot.lane.b32.xlu2 %v2093_v16, %s2097_s26 }
 0xaf1   : > { %v1621_v51 = vpop.permute.xlu2 %1620 }
 0xaf9   : > { %v1629_v43 = vpop.permute.xlu2 %1628 }
 0xb08   : > { %v1625_v41 = vpop.permute.xlu1 %1624 }
 0xb09   : > { %v1623_v59 = vpop.permute.xlu0 %1622 }
 0xb0a   : > { %v1626_v28 = vsel %vm847_vm3, %v1621_v51, %v1623_v59  ;;  %v1627_v42 = vsel %vm847_vm3, %v1623_v59, %v1625_v41 }
 0xb0b   : > { %1632 = vrot.lane.b32.xlu1 %v1627_v42, %s2097_s26  ;;  %1630 = vrot.lane.b32.xlu0 %v1626_v28, %s2097_s26  ;;  %s1998_s26 = scalar_lea.hbm %s1997_s21, 8 }
 0xb0c   : > { %p1999_p11 = scmp.ne.s32.totalorder %s1997_s21, %s1998_s26  ;;  %p2004_p1 = scmp.lt.s32.totalorder %s2002_s7, %s1998_s26 }
 0xb0e   : > { %p2000_p12 = pnand %p1999_p11, %p2210_p5  ;;  %p2005_p2 = por %p2004_p1, %p2003_p0 }
 0xb10   : > { %p2001_p13 = pneg %p2000_p12 }
 0xb12   : > { %p2006_p3 = pnand %p2005_p2, %p2001_p13 }
 0xb7d   : > { %v1633_v44 = vpop.permute.xlu1 %1632  ;;  %v1631_v60 = vpop.permute.xlu0 %1630 }
 0xb7e   : > { %v1642_v45 = vadd.f32 %v1633_v44, %v1616_v55  ;;  %v1636_v56 = vsel %vm1634_vm2, %v1631_v60, %v1633_v44  ;;  %v1635_v1 = vsel %vm1634_vm2, %v1629_v43, %v1631_v60 }
 0xb7f   : > { %v1641_v21 = vadd.f32 %v1636_v56, %v1615_v18  ;;  %v1640_v36 = vadd.f32 %v1635_v1, %v1614_v50 }
 0xb80   : > { %1650 = vrot.lane.b32.xlu1 %v1642_v45, %s2884_s25 }
 0xb81   : > { %1648 = vrot.lane.b32.xlu0 %v1641_v21, %s2884_s25  ;;  %1646 = vrot.lane.b32.xlu2 %v1640_v36, %s2884_s25 }
 0xb88   : > { %1672 = vperm.xlu1 %1970, %v1669_v40  }
 0xbdb   : > { %v1647_v3 = vpop.permute.xlu2 %1646 }
 0xbf2   : > { %v1651_v46 = vpop.permute.xlu1 %1650 }
 0xbf3   : > { %v1649_v63 = vpop.permute.xlu0 %1648 }
 0xbf4   : > { %v1652_v23 = vsel %vm847_vm3, %v1647_v3, %v1649_v63  ;;  %v1653_v61 = vsel %vm847_vm3, %v1649_v63, %v1651_v46 }
 0xbf5   : > { %1658 = vrot.lane.b32.xlu0 %v1653_v61, %s2098_s17  ;;  %1656 = vrot.lane.b32.xlu2 %v1652_v23, %s2098_s17 }
 0xbfd   : > { %1654 = vrot.lane.b32.xlu2 %v2093_v16, %s2098_s17 }
 0xc05   : > { %1681 = vrot.lane.b32.xlu2 %v2564_v47, %s2884_s25  ;;  %v1673_v47 = vpop.permute.xlu1 %1672 }
 0xc06   : > { %v1675_v13 = vperm.slane %v1673_v47, 0 }
 0xc4f   : > { %v1657_v7 = vpop.permute.xlu2 %1656 }
 0xc57   : > { %v1655_v48 = vpop.permute.xlu2 %1654 }
 0xc58   : > { %v1661_v27 = vsel %vm1660_vm4, %v1655_v48, %v1657_v7 }
 0xc59   : > { %v1666_v11 = vadd.f32 %v1661_v27, %v1640_v36 }
 0xc5b   : > { %v1676_v12 = vadd.f32 %v1675_v13, %v1666_v11 }
 0xc5f   : > { %v1682_v34 = vpop.permute.xlu2 %1681 }
 0xc60   : > { %v1683_v49 = vrot.slane %v1682_v34, 4 }
 0xc62   : > { %v1685_v6 = vsel %vm527_vm0, %v1683_v49, %v1684_v2 }
 0xc63   : > { %v1686_v16 = vsel %vm847_vm3, %v1682_v34, %v1685_v6 }
 0xc64   : > { %1688 = vst [vmem:[%s454_s3] sm:$0xff] %v1686_v16 }
 0xc67   : > { %v1659_v52 = vpop.permute.xlu0 %1658 }
 0xc68   : > { %v1662_v53 = vsel %vm1660_vm4, %v1657_v7, %v1659_v52  ;;  %v1668_v57 = vadd.f32 %v1659_v52, %v1642_v45 }
 0xc69   : > { %v1667_v8 = vadd.f32 %v1662_v53, %v1641_v21 }
 0xc6a   : > { %v1678_v10 = vadd.f32 %v1675_v13, %v1668_v57 }
 0xc6b   : > { %v1677_v0 = vadd.f32 %v1675_v13, %v1667_v8 }
 0xc6c   : > { %v1691_v9 = vperm.slane %v1678_v10, 0 }
 0xc6d   : > { %v1690_v20 = vperm.slane %v1677_v0, 0 }
 0xc6e   : > { %2009 = shalt.err (!%p2006_p3)
}
 0xc6f   : > { %1903 = dma.vmem_to_hbm [thread:$0]  (%p2210_p5), %s1728_s14, 128, %s1730_s22, %s1709_s23   ;;  %1699 = vrot.lane.b32.xlu1 %v1691_v9, %s2884_s25  ;;  %v1689_v24 = vperm.slane %v1676_v12, 0  ;;  %v1695_v62 = vrot.slane %v1690_v20, 4  ;;  %v1981_v15 = vld [vmem:[%s2260_s6] sm:$0xff] }
 0xc70   : > { %s1740_s21 = scalar_lea.hbm %s2840_s13, %s1899_s4  ;;  %s2895_s14 = sshll.u32 %s2761_s1, 3 }
 0xc71   : > { %v1696_v25 = vsel %vm527_vm0, %v1689_v24, %v1695_v62  ;;  %s461_s22 = scalar_lea.vmem [#allocation5], %s2895_s14  ;;  %s1744_s26 = sshll.u32 %s1740_s21, 4  ;;  %s1745_s26 = int_to_ptr.hbm [resolvable:$true] %s1744_s26 }
 0xc72   : > { %1697 = vrot.lane.b32.xlu0 %v1696_v25, %s2884_s25  ;;  %s1742_s23 = sshll.u32 %s461_s22, 4  ;;  %s1714_s11 = scalar_lea.sflag [#allocation6], %s2761_s1  ;;  %s1743_s23 = int_to_ptr.vmem [resolvable:$true] %s1742_s23 }
 0xc73   : > { %s2024_s25 = sshra.s32 %s1745_s26, 4  ;;  %s2030_s3 = scalar_lea.hbm %s2840_s13, 16  ;;  %s2025_s25 = int_to_ptr.hbm [resolvable:$true] %s2024_s25 }
 0xc74   : > { %s2026_s4 = scalar_lea.hbm %s2025_s25, 8  ;;  %p2031_p9 = scmp.lt.s32.totalorder %s2025_s25, %s2840_s13 }
 0xc75   : > { %p2027_p4 = scmp.ne.s32.totalorder %s2025_s25, %s2026_s4  ;;  %p2032_p10 = scmp.lt.s32.totalorder %s2030_s3, %s2026_s4 }
 0xc77   : > { %p2028_p7 = pnand %p2027_p4, %p2210_p5  ;;  %p2033_p11 = por %p2032_p10, %p2031_p9 }
 0xc79   : > { %p2029_p8 = pneg %p2028_p7 }
 0xc7b   : > { %p2034_p12 = pnand %p2033_p11, %p2029_p8 }
 0xce1   : > { %v1700_v58 = vpop.permute.xlu1 %1699 }
 0xce2   : > { %v1702_v26 = vrot.slane %v1700_v58, 4 }
 0xce4   : > { %v1698_v14 = vpop.permute.xlu0 %1697 }
 0xce5   : > { %v1701_v17 = vrot.slane %v1698_v14, 4 }
 0xce7   : > { %v1703_v29 = vsel %vm527_vm0, %v1701_v17, %v1702_v26 }
 0xce8   : > { %v1704_v54 = vsel %vm847_vm3, %v1698_v14, %v1703_v29 }
 0xce9   : > { %v1706_v30 = vadd.f32 %v1981_v15, %v1704_v54 }
 0xceb   : > { %1707 = vst [vmem:[%s461_s22] sm:$0xff] %v1706_v30 }
 0xcec   : > { %2037 = shalt.err (!%p2034_p12)
}
 0xced   : > { %1904 = dma.vmem_to_hbm [thread:$0]  (%p2210_p5), %s1743_s23, 128, %s1745_s26, %s1714_s11  }
 0xcee PF: > { %p1914_p13 = scmp.ge.s32.totalorder %s2076_s30, 2  ;;  %s1756_s6 = sand.u32 1, %s2064_s27  }
 0xcef   : > { %s1757_s1 = scalar_lea.sflag [#allocation4], %s1756_s6 }
 0xcf0   : > { %p1908_p0 = pnand %p1914_p13, %p2214_p6 }
 0xcf2   : > { %p1909_p1 = pneg %p1908_p0 }
 0xcf4   : > { %2055 = dma.done.wait (%p1909_p1), %s1757_s1, 128  }
 0xcf5   : > { %2057 = vsyncadd (%p1909_p1), %s1757_s1, 4294967168  ;;  %s1767_s0 = scalar_lea.sflag [#allocation6], %s1756_s6 }
 0xcf6   : > { %2059 = dma.done.wait (%p1909_p1), %s1767_s0, 128  }
 0xcf7   : > { %2061 = vsyncadd (%p1909_p1), %s1767_s0, 4294967168  ;;  %p29_p5 = scmp.ge.s32.totalorder %s2197_s15, 4   ;;  %s2896_s27 = smov %s2068_s28 }
 0xcf8   : > { %s2897_s28 = smov %s2072_s29  ;;  %s2898_s29 = smov %s2208_s18 }
 0xcf9   : > { %s2899_s30 = smov %s2197_s15  ;;  %31 = sbr.rel (!%p29_p5) target bundleno = 12 (0xc), region = 123 }
 0xcfe   :  { %1773 = vsyncpa [#allocation4], 1 }
 0xcff   :  { %1775 = vsyncpa [#allocation4 + $0x1], 1 }
 0xd00   :  { %1776 = vsyncpa [#allocation6], 1 }
 0xd01   :  { %1778 = vsyncpa [#allocation6 + $0x1], 1 }

</bundles_post_ra>
